<compile_context>
chip_gen: v7x
topology: tpu7x:2x2x1
jax: 0.10.0
libtpu: 0.0.40
codegen_flags: <defaults>
</compile_context>

<pallas_src>
import jax
import jax.numpy as jnp
import numpy as np
from jax import lax
from jax.experimental import pallas as pl
from jax.experimental.pallas import tpu as pltpu

_MIB = 1 << 20


# ----------------------------------------------------------------------------
# VMEM budgeting helpers
# ----------------------------------------------------------------------------
def _vmem_budget():
    """Scoped-VMEM budget derived from the device (~96 MiB on 128 MiB v5e/v6e parts,
    ~48 MiB on v7x's 64 MiB), with a conservative fallback if the query fails."""
    try:
        info = pltpu.get_tpu_info()
        cap = int(getattr(info, "vmem_capacity_bytes", 64 * _MIB))
    except Exception:
        cap = 64 * _MIB
    return (cap * 3) // 4


def _vmem_limit(block_bytes):
    return int(min(max(block_bytes + 4 * _MIB, 16 * _MIB), _vmem_budget()))


def _pick_block(n, candidates):
    for c in candidates:
        if n % c == 0:
            return c
    # TODO(synk): irregular n falls back to a single (possibly huge) block; very large
    # irregular shapes would need padding/masking instead.
    return n


# ----------------------------------------------------------------------------
# Linear (x @ w + b) kernel — bf16 MXU operands, f32 accumulate, resident weight
# ----------------------------------------------------------------------------
def linear_kernel(x_ref, w_ref, b_ref, o_ref):
    o_ref[...] = (
        jnp.dot(x_ref[...], w_ref[...], preferred_element_type=jnp.float32)
        + b_ref[...]
    ).astype(o_ref.dtype)


def linear(x, w, b, compute_dtype=jnp.bfloat16, out_dtype=jnp.float32):
    """y = x @ w + b.  x: (M, K), w: (K, N), b: (N,).  MXU operands in compute_dtype,
    f32 accumulation, bias added in f32.  The weight block stays VMEM-resident (same
    block index across the grid => DMA'd once) whenever the budget allows."""
    M, K = x.shape
    Kw, N = w.shape
    assert K == Kw
    xc = x.astype(compute_dtype)
    wc = w.astype(compute_dtype)
    b2 = b.reshape(1, N).astype(jnp.float32)
    isz = jnp.dtype(compute_dtype).itemsize
    budget = _vmem_budget()

    bm = _pick_block(M, (1024, 512, 256, 128, 64, 32, 16, 8))
    resident_bytes = 2 * bm * K * isz + 2 * K * N * isz + 4 * N + 2 * bm * N * 4
    if resident_bytes + 2 * _MIB <= budget:
        grid = (M // bm,)
        in_specs = [
            pl.BlockSpec((bm, K), lambda i: (i, 0)),
            pl.BlockSpec((K, N), lambda i: (0, 0)),   # resident: index never changes
            pl.BlockSpec((1, N), lambda i: (0, 0)),
        ]
        out_specs = pl.BlockSpec((bm, N), lambda i: (i, 0))
        semantics = ("parallel",)
        block_bytes = resident_bytes
    else:
        bn = _pick_block(N, (1024, 512, 256, 128))
        grid = (M // bm, N // bn)
        in_specs = [
            pl.BlockSpec((bm, K), lambda i, j: (i, 0)),
            pl.BlockSpec((K, bn), lambda i, j: (0, j)),
            pl.BlockSpec((1, bn), lambda i, j: (0, j)),
        ]
        out_specs = pl.BlockSpec((bm, bn), lambda i, j: (i, j))
        semantics = ("parallel", "parallel")
        block_bytes = 2 * (bm * K + K * bn) * isz + 4 * bn + 2 * bm * bn * 4

    return pl.pallas_call(
        linear_kernel,
        out_shape=jax.ShapeDtypeStruct((M, N), out_dtype),
        grid=grid,
        in_specs=in_specs,
        out_specs=out_specs,
        compiler_params=pltpu.CompilerParams(
            dimension_semantics=semantics,
            vmem_limit_bytes=_vmem_limit(block_bytes),
        ),
    )(xc, wc, b2)


# ----------------------------------------------------------------------------
# Flash attention kernel with the rel-pos bias fused into the QK contraction
# ----------------------------------------------------------------------------
def flash_attn_kernel(q_ref, k_ref, v_ref, o_ref, m_sc, l_sc, acc_sc):
    ki = pl.program_id(3)

    @pl.when(ki == 0)
    def _():
        m_sc[...] = jnp.full(m_sc.shape, -jnp.inf, jnp.float32)
        l_sc[...] = jnp.zeros(l_sc.shape, jnp.float32)
        acc_sc[...] = jnp.zeros(acc_sc.shape, jnp.float32)

    q = q_ref[0, 0]   # (tq, Da)  Da = hd (+ H + W when rel-pos is fused)
    k = k_ref[0, 0]   # (tk, Da)  k pre-scaled; trailing H+W cols are the one-hot expand
    v = v_ref[0, 0]   # (tk, hd)

    # One MXU contraction over Da computes scale*q.k^T AND the decomposed rel-pos bias
    # (rel factors dotted with the one-hot expand) in a single pass.  NT matmul: no k.T.
    s = lax.dot_general(q, k, (((1,), (1,)), ((), ())),
                        preferred_element_type=jnp.float32)

    # Online softmax (f32 statistics).
    m_prev = m_sc[...]
    m_new = jnp.maximum(m_prev, jnp.max(s, axis=-1, keepdims=True))
    alpha = jnp.exp(m_prev - m_new)
    p = jnp.exp(s - m_new)
    l_sc[...] = alpha * l_sc[...] + jnp.sum(p, axis=-1, keepdims=True)
    acc_sc[...] = alpha * acc_sc[...] + jnp.dot(
        p.astype(v.dtype), v, preferred_element_type=jnp.float32)
    m_sc[...] = m_new

    @pl.when(ki == pl.num_programs(3) - 1)
    def _():
        # Exact normalization (not approx reciprocal) for parity with torch softmax.
        o_ref[0, 0] = (acc_sc[...] / l_sc[...]).astype(o_ref.dtype)


def flash_attention(q_aug, k_aug, v):
    """q_aug/k_aug: (B, nH, S, Da), v: (B, nH, S, hd) -> (B, nH, S, hd)."""
    B, nH, S, Da = q_aug.shape
    hd = v.shape[-1]
    tq = _pick_block(S, (512, 256, 128, 64, 32, 16, 8))
    tk = _pick_block(S, (512, 256, 128, 64, 32, 16, 8))
    nq, nk = S // tq, S // tk
    isz = jnp.dtype(q_aug.dtype).itemsize
    block_bytes = (
        2 * (tq * Da + tk * Da + tk * hd) * isz   # double-buffered inputs
        + 2 * tq * hd * isz                       # output block
        + 4 * tq * (hd + 2)                       # f32 scratch (m, l, acc)
    )
    return pl.pallas_call(
        flash_attn_kernel,
        out_shape=jax.ShapeDtypeStruct((B, nH, S, hd), q_aug.dtype),
        grid=(B, nH, nq, nk),
        in_specs=[
            pl.BlockSpec((1, 1, tq, Da), lambda b, h, qi, ki: (b, h, qi, 0)),
            pl.BlockSpec((1, 1, tk, Da), lambda b, h, qi, ki: (b, h, ki, 0)),
            pl.BlockSpec((1, 1, tk, hd), lambda b, h, qi, ki: (b, h, ki, 0)),
        ],
        out_specs=pl.BlockSpec((1, 1, tq, hd), lambda b, h, qi, ki: (b, h, qi, 0)),
        scratch_shapes=[
            pltpu.VMEM((tq, 1), jnp.float32),    # running max
            pltpu.VMEM((tq, 1), jnp.float32),    # running denom
            pltpu.VMEM((tq, hd), jnp.float32),   # output accumulator
        ],
        compiler_params=pltpu.CompilerParams(
            dimension_semantics=("parallel", "parallel", "parallel", "arbitrary"),
            vmem_limit_bytes=_vmem_limit(block_bytes),
        ),
    )(q_aug, k_aug, v)


# ----------------------------------------------------------------------------
# JAX glue: relative position factors / expansion one-hots
# ----------------------------------------------------------------------------
def get_rel_pos_jax(q_size, k_size, rel_pos):
    max_rel_dist = int(2 * max(q_size, k_size) - 1)
    # TODO(synk): the F.interpolate 'linear' resize branch is not implemented; a module
    # constructed with input_size == (H, W) always takes the size-matched path.
    assert rel_pos.shape[0] == max_rel_dist
    q_coords = jnp.arange(q_size)[:, None] * max(k_size / q_size, 1.0)
    k_coords = jnp.arange(k_size)[None, :] * max(q_size / k_size, 1.0)
    rel = q_coords - k_coords + (k_size - 1) * max(q_size / k_size, 1.0)
    return rel_pos[rel.astype(jnp.int32)]  # (q_size, k_size, head_dim)


def rel_pos_factors(q, rel_pos_h, rel_pos_w, H, W):
    """Compact decomposed-bias factors (B, nH, S, H+W); bias[i,j]=rel_h[i,j//W]+rel_w[i,j%W]."""
    B, nH, S, hd = q.shape
    Rh = get_rel_pos_jax(H, H, rel_pos_h)   # (H, H, hd)
    Rw = get_rel_pos_jax(W, W, rel_pos_w)   # (W, W, hd)
    r_q = q.reshape(B, nH, H, W, hd)
    rel_h = jnp.einsum("bnhwc,hkc->bnhwk", r_q, Rh)   # (B, nH, H, W, H)
    rel_w = jnp.einsum("bnhwc,wkc->bnhwk", r_q, Rw)   # (B, nH, H, W, W)
    return jnp.concatenate(
        [rel_h.reshape(B, nH, S, H), rel_w.reshape(B, nH, S, W)], axis=-1)


def make_expand_t(H, W):
    """(S, H+W) one-hot rows: row j = [onehot_H(j // W) | onehot_W(j % W)]."""
    S = H * W
    j = jnp.arange(S)
    eh = ((j[:, None] // W) == jnp.arange(H)[None, :]).astype(jnp.float32)   # (S, H)
    ew = ((j[:, None] % W) == jnp.arange(W)[None, :]).astype(jnp.float32)    # (S, W)
    return jnp.concatenate([eh, ew], axis=1)


# ----------------------------------------------------------------------------
# Parameter prep (one-time) + full Attention forward (Pallas-backed)
# ----------------------------------------------------------------------------
def prepare_params(params, dim, num_heads):
    """One-time prep: fold the attention scale into the K columns of the qkv projection
    (q @ (k*scale)^T == (q*scale) @ k^T), keeping q itself unscaled for the rel-pos
    factors.  Done once outside the traced forward, so no per-call weight copy."""
    hd = dim // num_heads
    scale = hd ** (-0.5)
    p = dict(params)
    p["w_qkv"] = params["w_qkv"].at[:, dim:2 * dim].multiply(scale)
    p["b_qkv"] = params["b_qkv"].at[dim:2 * dim].multiply(scale)
    return p


def attention_forward(x, params, num_heads, use_rel_pos=True,
                      compute_dtype=jnp.bfloat16):
    """Forward pass of the Attention module.  `params` must come from prepare_params."""
    B, H, W, C = x.shape
    hd = C // num_heads
    S = H * W

    qkv = linear(x.reshape(B * S, C), params["w_qkv"], params["b_qkv"],
                 compute_dtype=compute_dtype)
    qkv = qkv.reshape(B, S, 3, num_heads, hd)
    # Head-major layouts so the attention kernel's per-head tiles are clean leading-dim
    # block DMAs (no masked lane slices / XLU permutes inside the kernel).
    q = jnp.transpose(qkv[:, :, 0], (0, 2, 1, 3))   # (B, nH, S, hd), unscaled
    k = jnp.transpose(qkv[:, :, 1], (0, 2, 1, 3))   # (B, nH, S, hd), pre-scaled via weights
    v = jnp.transpose(qkv[:, :, 2], (0, 2, 1, 3))   # (B, nH, S, hd)

    if use_rel_pos:
        relhw = rel_pos_factors(q, params["rel_pos_h"], params["rel_pos_w"], H, W)
        expand_t = make_expand_t(H, W)              # (S, H+W) one-hot
        # Augment the contraction dim: [q | relhw] @ [k | expand]^T fuses the decomposed
        # rel-pos bias into the QK^T MXU pass (deeper contraction, no second matmul).
        # TODO(synk): the expand block is replicated across B*nH here; at SAM scale it
        # could be concatenated per-block in-kernel to avoid the redundant HBM bytes.
        q_aug = jnp.concatenate([q, relhw], axis=-1)
        k_aug = jnp.concatenate(
            [k, jnp.broadcast_to(expand_t, (B, num_heads, S, H + W))], axis=-1)
    else:
        # No zero bias factors are allocated or DMA'd on this path.
        q_aug, k_aug = q, k

    q_aug = q_aug.astype(compute_dtype)
    k_aug = k_aug.astype(compute_dtype)
    v = v.astype(compute_dtype)

    out = flash_attention(q_aug, k_aug, v)                     # (B, nH, S, hd)
    out = jnp.transpose(out, (0, 2, 1, 3)).reshape(B * S, C)   # head-interleaved channels
    out = linear(out, params["w_proj"], params["b_proj"], compute_dtype=compute_dtype)
    return out.reshape(B, H, W, C)


# ----------------------------------------------------------------------------
# Pure-JAX reference (same math as the PyTorch module) for verification
# ----------------------------------------------------------------------------
def decomposed_rel_pos_bias(q, rel_pos_h, rel_pos_w, H, W):
    BnH, S, hd = q.shape
    Rh = get_rel_pos_jax(H, H, rel_pos_h)
    Rw = get_rel_pos_jax(W, W, rel_pos_w)
    r_q = q.reshape(BnH, H, W, hd)
    rel_h = jnp.einsum("bhwc,hkc->bhwk", r_q, Rh)
    rel_w = jnp.einsum("bhwc,wkc->bhwk", r_q, Rw)
    bias = rel_h[:, :, :, :, None] + rel_w[:, :, :, None, :]
    return bias.reshape(BnH, S, S)


def attention_reference(x, params, num_heads, use_rel_pos=True):
    B, H, W, C = x.shape
    hd = C // num_heads
    scale = hd ** (-0.5)
    S = H * W

    x_flat = x.reshape(B * S, C)
    qkv = x_flat @ params["w_qkv"] + params["b_qkv"]
    qkv = (
        qkv.reshape(B, S, 3, num_heads, hd)
        .transpose(2, 0, 3, 1, 4)
        .reshape(3, B * num_heads, S, hd)
    )
    q, k, v = qkv[0], qkv[1], qkv[2]

    attn = (q * scale) @ jnp.swapaxes(k, -2, -1)
    if use_rel_pos:
        attn = attn + decomposed_rel_pos_bias(
            q, params["rel_pos_h"], params["rel_pos_w"], H, W)
    attn = jax.nn.softmax(attn, axis=-1)
    out = attn @ v
    out = (
        out.reshape(B, num_heads, H, W, hd)
        .transpose(0, 2, 3, 1, 4)
        .reshape(B * S, C)
    )
    out = (out @ params["w_proj"] + params["b_proj"]).reshape(B, H, W, C)
    return out


# ----------------------------------------------------------------------------
# Main
# ----------------------------------------------------------------------------
if __name__ == "__main__":
    B, H, W = 2, 8, 8
    dim, num_heads = 64, 8
    head_dim = dim // num_heads

    key = jax.random.PRNGKey(0)
    kx, k1, k2, k3, k4, k5, k6 = jax.random.split(key, 7)

    x = jax.random.normal(kx, (B, H, W, dim), dtype=jnp.float32)

    params = {
        # Stored as (in, out); equivalent to nn.Linear weights (out, in) transposed.
        "w_qkv": 0.02 * jax.random.normal(k1, (dim, 3 * dim), dtype=jnp.float32),
        "b_qkv": 0.02 * jax.random.normal(k2, (3 * dim,), dtype=jnp.float32),
        "w_proj": 0.02 * jax.random.normal(k3, (dim, dim), dtype=jnp.float32),
        "b_proj": 0.02 * jax.random.normal(k4, (dim,), dtype=jnp.float32),
        # nn.Parameter(torch.zeros(2*H-1, head_dim)) — small random instead of zeros so
        # the rel-pos path is actually exercised (synthetic weights).
        "rel_pos_h": 0.02 * jax.random.normal(k5, (2 * H - 1, head_dim), dtype=jnp.float32),
        "rel_pos_w": 0.02 * jax.random.normal(k6, (2 * W - 1, head_dim), dtype=jnp.float32),
    }

    prep = prepare_params(params, dim, num_heads)            # one-time scale fold
    fwd = jax.jit(attention_forward, static_argnums=(2, 3, 4))

    ref = attention_reference(x, params, num_heads, use_rel_pos=True)

    # bf16-operand production path (f32 accumulation / softmax).
    out_bf16 = jax.block_until_ready(fwd(x, prep, num_heads, True, jnp.bfloat16))
    np.testing.assert_allclose(np.asarray(out_bf16), np.asarray(ref),
                               rtol=2e-2, atol=2e-3)

    # f32 path for tight numerical parity with the PyTorch math.
    out_f32 = jax.block_until_ready(fwd(x, prep, num_heads, True, jnp.float32))
    np.testing.assert_allclose(np.asarray(out_f32), np.asarray(ref),
                               rtol=1e-4, atol=1e-4)

    # use_rel_pos=False path (no bias factors allocated at all).
    ref_norel = attention_reference(x, params, num_heads, use_rel_pos=False)
    out_norel = jax.block_until_ready(fwd(x, prep, num_heads, False, jnp.float32))
    np.testing.assert_allclose(np.asarray(out_norel), np.asarray(ref_norel),
                               rtol=1e-4, atol=1e-4)

    assert out_bf16.shape == (B, H, W, dim)
    print("KERNEL_OK")
</pallas_src>

<mosaic_0001>
module attributes {stable_mosaic.version = 11 : i64} {
  func.func @linear_kernel(%arg0: i32, %arg1: memref<128x64xbf16, #tpu.memory_space<vmem>>, %arg2: memref<64x192xbf16, #tpu.memory_space<vmem>>, %arg3: memref<1x192xf32, #tpu.memory_space<vmem>>, %arg4: memref<128x192xf32, #tpu.memory_space<vmem>>) attributes {dimension_semantics = [#tpu.dimension_semantics<parallel>], iteration_bounds = array<i64: 1>, scalar_prefetch = 0 : i64, scratch_operands = 0 : i64, tpu.core_type = #tpu.core_type<tc>, window_params = [{transform_indices = @transform_0, window_bounds = array<i64: 128, 64>}, {pipeline_mode = #tpu.pipeline_mode<synchronous>, transform_indices = @transform_1, window_bounds = array<i64: 64, 192>}, {pipeline_mode = #tpu.pipeline_mode<synchronous>, transform_indices = @transform_2, window_bounds = array<i64: 1, 192>}, {transform_indices = @transform_3, window_bounds = array<i64: 128, 192>}]} {
    %c0 = arith.constant 0 : index
    %c0_0 = arith.constant 0 : index
    %0 = vector.load %arg1[%c0, %c0_0] : memref<128x64xbf16, #tpu.memory_space<vmem>>, vector<128x64xbf16>
    %c0_1 = arith.constant 0 : index
    %c0_2 = arith.constant 0 : index
    %1 = vector.load %arg2[%c0_1, %c0_2] : memref<64x192xbf16, #tpu.memory_space<vmem>>, vector<64x192xbf16>
    %cst = arith.constant dense<0.000000e+00> : vector<128x192xf32>
    %2 = tpu.matmul %0, %1, %cst {dimension_numbers = #tpu.dot_dimension_numbers<[1], [0], [0], [1], [0, 0, 1, 1], [], []>} : vector<128x64xbf16>, vector<64x192xbf16>, vector<128x192xf32> -> vector<128x192xf32>
    %c0_3 = arith.constant 0 : index
    %c0_4 = arith.constant 0 : index
    %3 = vector.load %arg3[%c0_3, %c0_4] : memref<1x192xf32, #tpu.memory_space<vmem>>, vector<1x192xf32>
    %4 = vector.broadcast %3 : vector<1x192xf32> to vector<128x192xf32>
    %5 = arith.addf %2, %4 : vector<128x192xf32>
    %c0_5 = arith.constant 0 : index
    %c0_6 = arith.constant 0 : index
    %6 = vector.load %arg4[%c0_5, %c0_6] : memref<128x192xf32, #tpu.memory_space<vmem>>, vector<128x192xf32>
    tpu.vector_store %arg4[%c0_5, %c0_6], %5 {strides = array<i32>} : memref<128x192xf32, #tpu.memory_space<vmem>>, vector<128x192xf32>,
    return
  }
  func.func @transform_0(%arg0: i32) -> (i32, i32) {
    %c0_i32 = arith.constant 0 : i32
    %c0_i32_0 = arith.constant 0 : i32
    return %arg0, %c0_i32 : i32, i32
  }
  func.func @transform_1(%arg0: i32) -> (i32, i32) {
    %c0_i32 = arith.constant 0 : i32
    %c0_i32_0 = arith.constant 0 : i32
    %c0_i32_1 = arith.constant 0 : i32
    return %c0_i32, %c0_i32_0 : i32, i32
  }
  func.func @transform_2(%arg0: i32) -> (i32, i32) {
    %c0_i32 = arith.constant 0 : i32
    %c0_i32_0 = arith.constant 0 : i32
    %c0_i32_1 = arith.constant 0 : i32
    return %c0_i32, %c0_i32_0 : i32, i32
  }
  func.func @transform_3(%arg0: i32) -> (i32, i32) {
    %c0_i32 = arith.constant 0 : i32
    %c0_i32_0 = arith.constant 0 : i32
    return %arg0, %c0_i32 : i32, i32
  }
}

module attributes {stable_mosaic.version = 11 : i64} {
  func.func @flash_attn_kernel(%arg0: i32, %arg1: i32, %arg2: i32, %arg3: i32, %arg4: memref<1x1x64x24xbf16, #tpu.memory_space<vmem>>, %arg5: memref<1x1x64x24xbf16, #tpu.memory_space<vmem>>, %arg6: memref<1x1x64x8xbf16, #tpu.memory_space<vmem>>, %arg7: memref<1x1x64x8xbf16, #tpu.memory_space<vmem>>, %arg8: memref<64x1xf32, #tpu.memory_space<vmem>>, %arg9: memref<64x1xf32, #tpu.memory_space<vmem>>, %arg10: memref<64x8xf32, #tpu.memory_space<vmem>>) attributes {dimension_semantics = [#tpu.dimension_semantics<parallel>, #tpu.dimension_semantics<parallel>, #tpu.dimension_semantics<parallel>, #tpu.dimension_semantics<arbitrary>], iteration_bounds = array<i64: 2, 8, 1, 1>, scalar_prefetch = 0 : i64, scratch_operands = 3 : i64, tpu.core_type = #tpu.core_type<tc>, window_params = [{transform_indices = @transform_0, window_bounds = array<i64: 1, 1, 64, 24>}, {transform_indices = @transform_1, window_bounds = array<i64: 1, 1, 64, 24>}, {transform_indices = @transform_2, window_bounds = array<i64: 1, 1, 64, 8>}, {transform_indices = @transform_3, window_bounds = array<i64: 1, 1, 64, 8>}]} {
    %c0_i32 = arith.constant 0 : i32
    %0 = arith.cmpi eq, %arg3, %c0_i32 : i32
    %1 = arith.extui %0 : i1 to i32
    %c0_i32_0 = arith.constant 0 : i32
    %2 = arith.cmpi ne, %1, %c0_i32_0 : i32
    scf.if %2 {
      %cst_29 = arith.constant 0xFF800000 : f32
      %36 = vector.broadcast %cst_29 : f32 to vector<64x1xf32>
      %c0_30 = arith.constant 0 : index
      %c0_31 = arith.constant 0 : index
      %37 = vector.load %arg8[%c0_30, %c0_31] : memref<64x1xf32, #tpu.memory_space<vmem>>, vector<64x1xf32>
      tpu.vector_store %arg8[%c0_30, %c0_31], %36 {strides = array<i32>} : memref<64x1xf32, #tpu.memory_space<vmem>>, vector<64x1xf32>,
      %cst_32 = arith.constant 0.000000e+00 : f32
      %38 = vector.broadcast %cst_32 : f32 to vector<64x1xf32>
      %c0_33 = arith.constant 0 : index
      %c0_34 = arith.constant 0 : index
      %39 = vector.load %arg9[%c0_33, %c0_34] : memref<64x1xf32, #tpu.memory_space<vmem>>, vector<64x1xf32>
      tpu.vector_store %arg9[%c0_33, %c0_34], %38 {strides = array<i32>} : memref<64x1xf32, #tpu.memory_space<vmem>>, vector<64x1xf32>,
      %cst_35 = arith.constant 0.000000e+00 : f32
      %40 = vector.broadcast %cst_35 : f32 to vector<64x8xf32>
      %c0_36 = arith.constant 0 : index
      %c0_37 = arith.constant 0 : index
      %41 = vector.load %arg10[%c0_36, %c0_37] : memref<64x8xf32, #tpu.memory_space<vmem>>, vector<64x8xf32>
      tpu.vector_store %arg10[%c0_36, %c0_37], %40 {strides = array<i32>} : memref<64x8xf32, #tpu.memory_space<vmem>>, vector<64x8xf32>,
    } else {
    }
    %c0 = arith.constant 0 : index
    %c0_1 = arith.constant 0 : index
    %c0_2 = arith.constant 0 : index
    %c0_3 = arith.constant 0 : index
    %3 = vector.load %arg4[%c0, %c0_1, %c0_2, %c0_3] : memref<1x1x64x24xbf16, #tpu.memory_space<vmem>>, vector<1x1x64x24xbf16>
    %4 = vector.shape_cast %3 : vector<1x1x64x24xbf16> to vector<64x24xbf16>
    %c0_4 = arith.constant 0 : index
    %c0_5 = arith.constant 0 : index
    %c0_6 = arith.constant 0 : index
    %c0_7 = arith.constant 0 : index
    %5 = vector.load %arg5[%c0_4, %c0_5, %c0_6, %c0_7] : memref<1x1x64x24xbf16, #tpu.memory_space<vmem>>, vector<1x1x64x24xbf16>
    %6 = vector.shape_cast %5 : vector<1x1x64x24xbf16> to vector<64x24xbf16>
    %c0_8 = arith.constant 0 : index
    %c0_9 = arith.constant 0 : index
    %c0_10 = arith.constant 0 : index
    %c0_11 = arith.constant 0 : index
    %7 = vector.load %arg6[%c0_8, %c0_9, %c0_10, %c0_11] : memref<1x1x64x8xbf16, #tpu.memory_space<vmem>>, vector<1x1x64x8xbf16>
    %8 = vector.shape_cast %7 : vector<1x1x64x8xbf16> to vector<64x8xbf16>
    %cst = arith.constant dense<0.000000e+00> : vector<64x64xf32>
    %9 = tpu.matmul %4, %6, %cst {dimension_numbers = #tpu.dot_dimension_numbers<[1], [1], [0], [0], [0, 0, 1, 0], [], []>} : vector<64x24xbf16>, vector<64x24xbf16>, vector<64x64xf32> -> vector<64x64xf32>
    %c0_12 = arith.constant 0 : index
    %c0_13 = arith.constant 0 : index
    %10 = vector.load %arg8[%c0_12, %c0_13] : memref<64x1xf32, #tpu.memory_space<vmem>>, vector<64x1xf32>
    %cst_14 = arith.constant dense<0xFF800000> : vector<64xf32>
    %11 = vector.multi_reduction <maximumf>, %9, %cst_14 [1] : vector<64x64xf32> to vector<64xf32>
    %12 = vector.shape_cast %11 : vector<64xf32> to vector<64x1xf32>
    %13 = arith.maximumf %10, %12 : vector<64x1xf32>
    %14 = arith.subf %10, %13 : vector<64x1xf32>
    %15 = math.exp %14 : vector<64x1xf32>
    %16 = vector.broadcast %13 : vector<64x1xf32> to vector<64x64xf32>
    %17 = arith.subf %9, %16 : vector<64x64xf32>
    %18 = math.exp %17 : vector<64x64xf32>
    %c0_15 = arith.constant 0 : index
    %c0_16 = arith.constant 0 : index
    %19 = vector.load %arg9[%c0_15, %c0_16] : memref<64x1xf32, #tpu.memory_space<vmem>>, vector<64x1xf32>
    %20 = arith.mulf %15, %19 : vector<64x1xf32>
    %cst_17 = arith.constant dense<0.000000e+00> : vector<64xf32>
    %21 = vector.multi_reduction <add>, %18, %cst_17 [1] : vector<64x64xf32> to vector<64xf32>
    %22 = vector.shape_cast %21 : vector<64xf32> to vector<64x1xf32>
    %23 = arith.addf %20, %22 : vector<64x1xf32>
    %c0_18 = arith.constant 0 : index
    %c0_19 = arith.constant 0 : index
    %24 = vector.load %arg9[%c0_18, %c0_19] : memref<64x1xf32, #tpu.memory_space<vmem>>, vector<64x1xf32>
    tpu.vector_store %arg9[%c0_18, %c0_19], %23 {strides = array<i32>} : memref<64x1xf32, #tpu.memory_space<vmem>>, vector<64x1xf32>,
    %c0_20 = arith.constant 0 : index
    %c0_21 = arith.constant 0 : index
    %25 = vector.load %arg10[%c0_20, %c0_21] : memref<64x8xf32, #tpu.memory_space<vmem>>, vector<64x8xf32>
    %26 = vector.broadcast %15 : vector<64x1xf32> to vector<64x8xf32>
    %27 = arith.mulf %26, %25 : vector<64x8xf32>
    %28 = arith.truncf %18 : vector<64x64xf32> to vector<64x64xbf16>
    %cst_22 = arith.constant dense<0.000000e+00> : vector<64x8xf32>
    %29 = tpu.matmul %28, %8, %cst_22 {dimension_numbers = #tpu.dot_dimension_numbers<[1], [0], [0], [1], [0, 0, 1, 1], [], []>} : vector<64x64xbf16>, vector<64x8xbf16>, vector<64x8xf32> -> vector<64x8xf32>
    %30 = arith.addf %27, %29 : vector<64x8xf32>
    %c0_23 = arith.constant 0 : index
    %c0_24 = arith.constant 0 : index
    %31 = vector.load %arg10[%c0_23, %c0_24] : memref<64x8xf32, #tpu.memory_space<vmem>>, vector<64x8xf32>
    tpu.vector_store %arg10[%c0_23, %c0_24], %30 {strides = array<i32>} : memref<64x8xf32, #tpu.memory_space<vmem>>, vector<64x8xf32>,
    %c0_25 = arith.constant 0 : index
    %c0_26 = arith.constant 0 : index
    %32 = vector.load %arg8[%c0_25, %c0_26] : memref<64x1xf32, #tpu.memory_space<vmem>>, vector<64x1xf32>
    tpu.vector_store %arg8[%c0_25, %c0_26], %13 {strides = array<i32>} : memref<64x1xf32, #tpu.memory_space<vmem>>, vector<64x1xf32>,
    %c0_i32_27 = arith.constant 0 : i32
    %33 = arith.cmpi eq, %arg3, %c0_i32_27 : i32
    %34 = arith.extui %33 : i1 to i32
    %c0_i32_28 = arith.constant 0 : i32
    %35 = arith.cmpi ne, %34, %c0_i32_28 : i32
    scf.if %35 {
      %c0_29 = arith.constant 0 : index
      %c0_30 = arith.constant 0 : index
      %36 = vector.load %arg10[%c0_29, %c0_30] : memref<64x8xf32, #tpu.memory_space<vmem>>, vector<64x8xf32>
      %c0_31 = arith.constant 0 : index
      %c0_32 = arith.constant 0 : index
      %37 = vector.load %arg9[%c0_31, %c0_32] : memref<64x1xf32, #tpu.memory_space<vmem>>, vector<64x1xf32>
      %38 = vector.broadcast %37 : vector<64x1xf32> to vector<64x8xf32>
      %39 = arith.divf %36, %38 : vector<64x8xf32>
      %40 = arith.truncf %39 : vector<64x8xf32> to vector<64x8xbf16>
      %c0_33 = arith.constant 0 : index
      %c0_34 = arith.constant 0 : index
      %c0_35 = arith.constant 0 : index
      %c0_36 = arith.constant 0 : index
      %41 = vector.load %arg7[%c0_33, %c0_34, %c0_35, %c0_36] : memref<1x1x64x8xbf16, #tpu.memory_space<vmem>>, vector<1x1x64x8xbf16>
      %42 = vector.shape_cast %41 : vector<1x1x64x8xbf16> to vector<64x8xbf16>
      %43 = vector.shape_cast %40 : vector<64x8xbf16> to vector<1x1x64x8xbf16>
      tpu.vector_store %arg7[%c0_33, %c0_34, %c0_35, %c0_36], %43 {strides = array<i32>} : memref<1x1x64x8xbf16, #tpu.memory_space<vmem>>, vector<1x1x64x8xbf16>,
    } else {
    }
    return
  }
  func.func @transform_0(%arg0: i32, %arg1: i32, %arg2: i32, %arg3: i32) -> (i32, i32, i32, i32) {
    %c0_i32 = arith.constant 0 : i32
    %c0_i32_0 = arith.constant 0 : i32
    return %arg0, %arg1, %arg2, %c0_i32 : i32, i32, i32, i32
  }
  func.func @transform_1(%arg0: i32, %arg1: i32, %arg2: i32, %arg3: i32) -> (i32, i32, i32, i32) {
    %c0_i32 = arith.constant 0 : i32
    %c0_i32_0 = arith.constant 0 : i32
    return %arg0, %arg1, %arg3, %c0_i32 : i32, i32, i32, i32
  }
  func.func @transform_2(%arg0: i32, %arg1: i32, %arg2: i32, %arg3: i32) -> (i32, i32, i32, i32) {
    %c0_i32 = arith.constant 0 : i32
    %c0_i32_0 = arith.constant 0 : i32
    return %arg0, %arg1, %arg3, %c0_i32 : i32, i32, i32, i32
  }
  func.func @transform_3(%arg0: i32, %arg1: i32, %arg2: i32, %arg3: i32) -> (i32, i32, i32, i32) {
    %c0_i32 = arith.constant 0 : i32
    %c0_i32_0 = arith.constant 0 : i32
    return %arg0, %arg1, %arg2, %c0_i32 : i32, i32, i32, i32
  }
}

module attributes {stable_mosaic.version = 11 : i64} {
  func.func @linear_kernel(%arg0: i32, %arg1: memref<128x64xbf16, #tpu.memory_space<vmem>>, %arg2: memref<64x64xbf16, #tpu.memory_space<vmem>>, %arg3: memref<1x64xf32, #tpu.memory_space<vmem>>, %arg4: memref<128x64xf32, #tpu.memory_space<vmem>>) attributes {dimension_semantics = [#tpu.dimension_semantics<parallel>], iteration_bounds = array<i64: 1>, scalar_prefetch = 0 : i64, scratch_operands = 0 : i64, tpu.core_type = #tpu.core_type<tc>, window_params = [{transform_indices = @transform_0, window_bounds = array<i64: 128, 64>}, {pipeline_mode = #tpu.pipeline_mode<synchronous>, transform_indices = @transform_1, window_bounds = array<i64: 64, 64>}, {pipeline_mode = #tpu.pipeline_mode<synchronous>, transform_indices = @transform_2, window_bounds = array<i64: 1, 64>}, {transform_indices = @transform_3, window_bounds = array<i64: 128, 64>}]} {
    %c0 = arith.constant 0 : index
    %c0_0 = arith.constant 0 : index
    %0 = vector.load %arg1[%c0, %c0_0] : memref<128x64xbf16, #tpu.memory_space<vmem>>, vector<128x64xbf16>
    %c0_1 = arith.constant 0 : index
    %c0_2 = arith.constant 0 : index
    %1 = vector.load %arg2[%c0_1, %c0_2] : memref<64x64xbf16, #tpu.memory_space<vmem>>, vector<64x64xbf16>
    %cst = arith.constant dense<0.000000e+00> : vector<128x64xf32>
    %2 = tpu.matmul %0, %1, %cst {dimension_numbers = #tpu.dot_dimension_numbers<[1], [0], [0], [1], [0, 0, 1, 1], [], []>} : vector<128x64xbf16>, vector<64x64xbf16>, vector<128x64xf32> -> vector<128x64xf32>
    %c0_3 = arith.constant 0 : index
    %c0_4 = arith.constant 0 : index
    %3 = vector.load %arg3[%c0_3, %c0_4] : memref<1x64xf32, #tpu.memory_space<vmem>>, vector<1x64xf32>
    %4 = vector.broadcast %3 : vector<1x64xf32> to vector<128x64xf32>
    %5 = arith.addf %2, %4 : vector<128x64xf32>
    %c0_5 = arith.constant 0 : index
    %c0_6 = arith.constant 0 : index
    %6 = vector.load %arg4[%c0_5, %c0_6] : memref<128x64xf32, #tpu.memory_space<vmem>>, vector<128x64xf32>
    tpu.vector_store %arg4[%c0_5, %c0_6], %5 {strides = array<i32>} : memref<128x64xf32, #tpu.memory_space<vmem>>, vector<128x64xf32>,
    return
  }
  func.func @transform_0(%arg0: i32) -> (i32, i32) {
    %c0_i32 = arith.constant 0 : i32
    %c0_i32_0 = arith.constant 0 : i32
    return %arg0, %c0_i32 : i32, i32
  }
  func.func @transform_1(%arg0: i32) -> (i32, i32) {
    %c0_i32 = arith.constant 0 : i32
    %c0_i32_0 = arith.constant 0 : i32
    %c0_i32_1 = arith.constant 0 : i32
    return %c0_i32, %c0_i32_0 : i32, i32
  }
  func.func @transform_2(%arg0: i32) -> (i32, i32) {
    %c0_i32 = arith.constant 0 : i32
    %c0_i32_0 = arith.constant 0 : i32
    %c0_i32_1 = arith.constant 0 : i32
    return %c0_i32, %c0_i32_0 : i32, i32
  }
  func.func @transform_3(%arg0: i32) -> (i32, i32) {
    %c0_i32 = arith.constant 0 : i32
    %c0_i32_0 = arith.constant 0 : i32
    return %arg0, %c0_i32 : i32, i32
  }
}

</mosaic_0001>

<bundles_post_ra>
// kernel: attention_forward.3
= control target key start
LH: loop header
LB: loop body
LE: loop exit
PB: predicated region body
PF: predicated region fallthrough
CT: control target
= control target key end

     0   :  { %v358_v1 = vmov 0   ;;  %vm131_vm0 = vcmask 523264   ;;  %v41_v17 = vlaneseq  ;;  %s586_s1 = inlined_call_operand.vmem [shape: bf16[64,192], index: 1, kind: input, shape index: {}]   ;;  %s587_s0 = inlined_call_operand.vmem [shape: bf16[128,64], index: 0, kind: input, shape index: {}]   ;;  %s588_s2 = inlined_call_operand.vmem [shape: f32[1,192], index: 2, kind: input, shape index: {}]   ;;  %s589_s3 = inlined_call_operand.vmem [shape: f32[128,192], index: 3, kind: output, shape index: {}]  }
   0x1   :  { %v338_v0 = vld [vmem:[%s586_s1 + $0x4] ss:$8 sps:$4 sm:$0xff]   ;;  %188 = vmatprep.mubr.bf16.mxu0 %v358_v1  ;;  %228 = vmatprep.mubr.bf16.mxu1 %v358_v1  ;;  %v340_v2 = vld [vmem:[%s586_s1] ss:$8 sps:$4 sm:$0xff]   ;;  %v341_v3 = vld [vmem:[%s586_s1 + $0x14] ss:$8 sps:$4 sm:$0xff]  }
   0x2   :  { %156 = vmatprep.subr.bf16.mxu0 %v338_v0  ;;  %329 = vmatprep.subr.bf16.mxu1 %v338_v0  ;;  %v343_v4 = vld [vmem:[%s586_s1 + $0x10] ss:$8 sps:$4 sm:$0xff]   ;;  %v344_v5 = vld [vmem:[%s586_s1 + $0x24] ss:$8 sps:$4 sm:$0xff]   ;;  %v346_v6 = vld [vmem:[%s586_s1 + $0x20] ss:$8 sps:$4 sm:$0xff]  }
   0x3   :  { %157 = vmatpush1.bf16.msra.mxu0 %v340_v2  ;;  %333 = vmatpush1.bf16.msra.mxu1 %v340_v2  ;;  %v347_v7 = vld [vmem:[%s586_s1 + $0x34] ss:$8 sps:$4 sm:$0xff]   ;;  %v349_v8 = vld [vmem:[%s586_s1 + $0x30] ss:$8 sps:$4 sm:$0xff]   ;;  %v350_v9 = vld [vmem:[%s587_s0] sm:$0xff]   ;;  %v42_v18 = vshrl.u32 %v41_v17, 7 }
   0x4   :  { %158 = vmatprep.subr.bf16.mxu0 %v341_v3  ;;  %330 = vmatprep.subr.bf16.mxu1 %v341_v3  ;;  %v351_v10 = vld [vmem:[%s587_s0 + $0x20] sm:$0xff]   ;;  %v352_v11 = vld [vmem:[%s587_s0 + $0x8] sm:$0xff]   ;;  %v354_v13 = vld [vmem:[%s587_s0 + $0x10] sm:$0xff]  }
   0x5   :  { %v353_v12 = vld [vmem:[%s587_s0 + $0x28] sm:$0xff]   ;;  %v355_v14 = vld [vmem:[%s587_s0 + $0x30] sm:$0xff]   ;;  %v356_v15 = vld [vmem:[%s587_s0 + $0x18] sm:$0xff]   ;;  %v43_v19 = vsub.s32 0, %v42_v18  ;;  %v47_v21 = vsub.s32 1, %v42_v18 }
   0x6   :  { %v357_v16 = vld [vmem:[%s587_s0 + $0x38] sm:$0xff]   ;;  %v39_v20 = vld [vmem:[%s588_s2] sm:$0x3] }
   0x7   :  { %159 = vmatpush1.bf16.msra.mxu0 %v343_v4  ;;  %334 = vmatpush1.bf16.msra.mxu1 %v343_v4  ;;  %v438_v22 = vrot.slane %v39_v20, %v43_v19  ;;  %v440_v23 = vrot.slane %v39_v20, %v47_v21 }
   0x8   :  { %160 = vmatprep.subr.bf16.mxu0 %v344_v5  ;;  %331 = vmatprep.subr.bf16.mxu1 %v344_v5 }
   0xb   :  { %161 = vmatpush1.bf16.msra.mxu0 %v346_v6  ;;  %335 = vmatpush1.bf16.msra.mxu1 %v346_v6 }
   0xc   :  { %162 = vmatprep.subr.bf16.mxu0 %v347_v7  ;;  %332 = vmatprep.subr.bf16.mxu1 %v347_v7 }
   0xf   :  { %163 = vmatpush1.bf16.msra.mxu0 %v349_v8  ;;  %336 = vmatpush1.bf16.msra.mxu1 %v349_v8 }
  0x12   :  { %321 = vmatmul.mubr.msk.bf16.vlgmr.msra.gmra.mrb[0].mxu0 %vm131_vm0, %v350_v9  ;;  %325 = vmatmul.mubr.msk.bf16.vlgmr.msra.gmra.mrb[0].mxu1 %vm131_vm0, %v351_v10 }
  0x13   :  { %198 = vmatprep.mubr.bf16.mxu0 %v358_v1  ;;  %238 = vmatprep.mubr.bf16.mxu1 %v358_v1 }
  0x1a   :  { %322 = vmatmul.mubr.msk.bf16.gmra.mrb[4].mxu0 %vm131_vm0, %v352_v11  ;;  %326 = vmatmul.mubr.msk.bf16.gmra.mrb[4].mxu1 %vm131_vm0, %v353_v12 }
  0x1b   :  { %208 = vmatprep.mubr.bf16.mxu0 %v358_v1  ;;  %248 = vmatprep.mubr.bf16.mxu1 %v358_v1 }
  0x22   :  { %323 = vmatmul.mubr.msk.bf16.gmra.mrb[8].mxu0 %vm131_vm0, %v354_v13  ;;  %327 = vmatmul.mubr.msk.bf16.gmra.mrb[8].mxu1 %vm131_vm0, %v355_v14 }
  0x23   :  { %218 = vmatprep.mubr.bf16.mxu0 %v358_v1  ;;  %258 = vmatprep.mubr.bf16.mxu1 %v358_v1 }
  0x2a   :  { %324 = vmatmul.mubr.msk.bf16.gmra.mrb[12].mxu0 %vm131_vm0, %v356_v15  ;;  %328 = vmatmul.mubr.msk.bf16.gmra.mrb[12].mxu1 %vm131_vm0, %v357_v16 }
  0xe5   :  { %v190_v24 = vpop.f32.mrb[0].mxu0  ;;  %v230_v25 = vpop.f32.mrb[0].mxu1 }
  0xe6   :  { %v191_v26 = vadd.f32 %v190_v24, %v438_v22  ;;  %v231_v27 = vadd.f32 %v230_v25, %v438_v22  ;;  %v192_v28 = vpop.f32.mrb[1].mxu0  ;;  %v232_v29 = vpop.f32.mrb[1].mxu1 }
  0xe7   :  { %v193_v30 = vadd.f32 %v192_v28, %v440_v23  ;;  %v233_v31 = vadd.f32 %v232_v29, %v440_v23  ;;  %v194_v32 = vpop.f32.mrb[2].mxu0  ;;  %v234_v33 = vpop.f32.mrb[2].mxu1 }
  0xe8   :  { %269 = vst [vmem:[%s589_s3] sm:$0xff] %v191_v26  ;;  %285 = vst [vmem:[%s589_s3 + $0x80] sm:$0xff] %v231_v27  ;;  %v195_v34 = vadd.f32 %v194_v32, %v438_v22  ;;  %v235_v35 = vadd.f32 %v234_v33, %v438_v22  ;;  %v196_v36 = vpop.f32.mrb[3].mxu0  ;;  %v236_v37 = vpop.f32.mrb[3].mxu1 }
  0xe9   :  { %270 = vst.msk [vmem:[%s589_s3 + $0x8] sm:$0xff] %vm131_vm0, %v193_v30  ;;  %286 = vst.msk [vmem:[%s589_s3 + $0x88] sm:$0xff] %vm131_vm0, %v233_v31  ;;  %v197_v38 = vadd.f32 %v196_v36, %v440_v23  ;;  %v237_v39 = vadd.f32 %v236_v37, %v440_v23 }
  0xea   :  { %271 = vst [vmem:[%s589_s3 + $0x10] sm:$0xff] %v195_v34  ;;  %287 = vst [vmem:[%s589_s3 + $0x90] sm:$0xff] %v235_v35 }
  0xeb   :  { %272 = vst.msk [vmem:[%s589_s3 + $0x18] sm:$0xff] %vm131_vm0, %v197_v38  ;;  %288 = vst.msk [vmem:[%s589_s3 + $0x98] sm:$0xff] %vm131_vm0, %v237_v39 }
  0xed   :  { %v200_v40 = vpop.f32.mrb[4].mxu0  ;;  %v240_v41 = vpop.f32.mrb[4].mxu1 }
  0xee   :  { %v201_v42 = vadd.f32 %v200_v40, %v438_v22  ;;  %v241_v43 = vadd.f32 %v240_v41, %v438_v22  ;;  %v202_v44 = vpop.f32.mrb[5].mxu0  ;;  %v242_v45 = vpop.f32.mrb[5].mxu1 }
  0xef   :  { %v203_v46 = vadd.f32 %v202_v44, %v440_v23  ;;  %v243_v47 = vadd.f32 %v242_v45, %v440_v23  ;;  %v204_v48 = vpop.f32.mrb[6].mxu0  ;;  %v244_v49 = vpop.f32.mrb[6].mxu1 }
  0xf0   :  { %273 = vst [vmem:[%s589_s3 + $0x20] sm:$0xff] %v201_v42  ;;  %289 = vst [vmem:[%s589_s3 + $0xa0] sm:$0xff] %v241_v43  ;;  %v205_v50 = vadd.f32 %v204_v48, %v438_v22  ;;  %v245_v51 = vadd.f32 %v244_v49, %v438_v22  ;;  %v206_v52 = vpop.f32.mrb[7].mxu0  ;;  %v246_v53 = vpop.f32.mrb[7].mxu1 }
  0xf1   :  { %274 = vst.msk [vmem:[%s589_s3 + $0x28] sm:$0xff] %vm131_vm0, %v203_v46  ;;  %290 = vst.msk [vmem:[%s589_s3 + $0xa8] sm:$0xff] %vm131_vm0, %v243_v47  ;;  %v207_v54 = vadd.f32 %v206_v52, %v440_v23  ;;  %v247_v55 = vadd.f32 %v246_v53, %v440_v23 }
  0xf2   :  { %275 = vst [vmem:[%s589_s3 + $0x30] sm:$0xff] %v205_v50  ;;  %291 = vst [vmem:[%s589_s3 + $0xb0] sm:$0xff] %v245_v51 }
  0xf3   :  { %276 = vst.msk [vmem:[%s589_s3 + $0x38] sm:$0xff] %vm131_vm0, %v207_v54  ;;  %292 = vst.msk [vmem:[%s589_s3 + $0xb8] sm:$0xff] %vm131_vm0, %v247_v55 }
  0xf5   :  { %v210_v56 = vpop.f32.mrb[8].mxu0  ;;  %v250_v57 = vpop.f32.mrb[8].mxu1 }
  0xf6   :  { %v211_v58 = vadd.f32 %v210_v56, %v438_v22  ;;  %v251_v59 = vadd.f32 %v250_v57, %v438_v22  ;;  %v212_v60 = vpop.f32.mrb[9].mxu0  ;;  %v252_v61 = vpop.f32.mrb[9].mxu1 }
  0xf7   :  { %v213_v62 = vadd.f32 %v212_v60, %v440_v23  ;;  %v253_v63 = vadd.f32 %v252_v61, %v440_v23  ;;  %v214_v0 = vpop.f32.mrb[10].mxu0  ;;  %v254_v1 = vpop.f32.mrb[10].mxu1 }
  0xf8   :  { %277 = vst [vmem:[%s589_s3 + $0x40] sm:$0xff] %v211_v58  ;;  %293 = vst [vmem:[%s589_s3 + $0xc0] sm:$0xff] %v251_v59  ;;  %v215_v2 = vadd.f32 %v214_v0, %v438_v22  ;;  %v255_v3 = vadd.f32 %v254_v1, %v438_v22  ;;  %v216_v4 = vpop.f32.mrb[11].mxu0  ;;  %v256_v5 = vpop.f32.mrb[11].mxu1 }
  0xf9   :  { %278 = vst.msk [vmem:[%s589_s3 + $0x48] sm:$0xff] %vm131_vm0, %v213_v62  ;;  %294 = vst.msk [vmem:[%s589_s3 + $0xc8] sm:$0xff] %vm131_vm0, %v253_v63  ;;  %v217_v6 = vadd.f32 %v216_v4, %v440_v23  ;;  %v257_v7 = vadd.f32 %v256_v5, %v440_v23 }
  0xfa   :  { %279 = vst [vmem:[%s589_s3 + $0x50] sm:$0xff] %v215_v2  ;;  %295 = vst [vmem:[%s589_s3 + $0xd0] sm:$0xff] %v255_v3 }
  0xfb   :  { %280 = vst.msk [vmem:[%s589_s3 + $0x58] sm:$0xff] %vm131_vm0, %v217_v6  ;;  %296 = vst.msk [vmem:[%s589_s3 + $0xd8] sm:$0xff] %vm131_vm0, %v257_v7 }
  0xfd   :  { %v220_v8 = vpop.f32.mrb[12].mxu0  ;;  %v260_v9 = vpop.f32.mrb[12].mxu1 }
  0xfe   :  { %v221_v10 = vadd.f32 %v220_v8, %v438_v22  ;;  %v261_v11 = vadd.f32 %v260_v9, %v438_v22  ;;  %v222_v12 = vpop.f32.mrb[13].mxu0  ;;  %v262_v13 = vpop.f32.mrb[13].mxu1 }
  0xff   :  { %v223_v14 = vadd.f32 %v222_v12, %v440_v23  ;;  %v263_v15 = vadd.f32 %v262_v13, %v440_v23  ;;  %v224_v16 = vpop.f32.mrb[14].mxu0  ;;  %v264_v17 = vpop.f32.mrb[14].mxu1 }
 0x100   :  { %281 = vst [vmem:[%s589_s3 + $0x60] sm:$0xff] %v221_v10  ;;  %297 = vst [vmem:[%s589_s3 + $0xe0] sm:$0xff] %v261_v11  ;;  %v225_v18 = vadd.f32 %v224_v16, %v438_v22  ;;  %v265_v19 = vadd.f32 %v264_v17, %v438_v22  ;;  %v226_v20 = vpop.f32.mrb[15].mxu0  ;;  %v266_v21 = vpop.f32.mrb[15].mxu1 }
 0x101   :  { %282 = vst.msk [vmem:[%s589_s3 + $0x68] sm:$0xff] %vm131_vm0, %v223_v14  ;;  %298 = vst.msk [vmem:[%s589_s3 + $0xe8] sm:$0xff] %vm131_vm0, %v263_v15  ;;  %v227_v24 = vadd.f32 %v226_v20, %v440_v23  ;;  %v267_v25 = vadd.f32 %v266_v21, %v440_v23 }
 0x102   :  { %283 = vst [vmem:[%s589_s3 + $0x70] sm:$0xff] %v225_v18  ;;  %299 = vst [vmem:[%s589_s3 + $0xf0] sm:$0xff] %v265_v19 }
 0x103   :  { %284 = vst.msk [vmem:[%s589_s3 + $0x78] sm:$0xff] %vm131_vm0, %v227_v24  ;;  %300 = vst.msk [vmem:[%s589_s3 + $0xf8] sm:$0xff] %vm131_vm0, %v267_v25 }

// kernel: attention_forward.5
= control target key start
LH: loop header
LB: loop body
LE: loop exit
PB: predicated region body
PF: predicated region fallthrough
CT: control target
= control target key end

     0   :  { %vm111_vm0 = vcmask 523264   ;;  %s467_s0 = inlined_call_operand.vmem [shape: bf16[128,64], index: 0, kind: input, shape index: {}]   ;;  %s468_s1 = inlined_call_operand.vmem [shape: bf16[64,64], index: 1, kind: input, shape index: {}]   ;;  %s469_s2 = inlined_call_operand.vmem [shape: f32[1,64], index: 2, kind: input, shape index: {}]   ;;  %s470_s3 = inlined_call_operand.hbm [shape: f32[128,64], index: 3, kind: output, shape index: {}]  }
   0x1   :  { %v333_v0 = vld [vmem:[%s468_s1] sm:$0xff]   ;;  %v334_v1 = vld [vmem:[%s468_s1 + $0x8] sm:$0xff]   ;;  %v335_v2 = vld [vmem:[%s468_s1 + $0x10] sm:$0xff]  }
   0x2   :  { %298 = vmatprep.subr.bf16.mxu0 %v333_v0  ;;  %322 = vmatprep.subr.bf16.mxu1 %v333_v0  ;;  %v337_v3 = vld [vmem:[%s467_s0] sm:$0xff]   ;;  %v336_v5 = vld [vmem:[%s468_s1 + $0x18] sm:$0xff]  }
   0x3   :  { %299 = vmatpush3.bf16.msra.mxu0 %v333_v0  ;;  %326 = vmatpush3.bf16.msra.mxu1 %v333_v0  ;;  %v338_v4 = vld [vmem:[%s467_s0 + $0x20] sm:$0xff]  }
   0x4   :  { %300 = vmatprep.subr.bf16.mxu0 %v334_v1  ;;  %323 = vmatprep.subr.bf16.mxu1 %v334_v1 }
   0x5   :  { %306 = vmatprep.mubr.msk.bf16.mxu0 %vm111_vm0, %v337_v3  ;;  %314 = vmatprep.mubr.msk.bf16.mxu1 %vm111_vm0, %v338_v4 }
   0x7   :  { %301 = vmatpush3.bf16.msra.mxu0 %v334_v1  ;;  %327 = vmatpush3.bf16.msra.mxu1 %v334_v1 }
   0x8   :  { %302 = vmatprep.subr.bf16.mxu0 %v335_v2  ;;  %324 = vmatprep.subr.bf16.mxu1 %v335_v2 }
   0xb   :  { %303 = vmatpush3.bf16.msra.mxu0 %v335_v2  ;;  %328 = vmatpush3.bf16.msra.mxu1 %v335_v2 }
   0xc   :  { %304 = vmatprep.subr.bf16.mxu0 %v336_v5  ;;  %325 = vmatprep.subr.bf16.mxu1 %v336_v5 }
   0xd   :  { %8 = vsyncpa [#allocation3], 0  ;;  %v339_v6 = vld [vmem:[%s467_s0 + $0x8] sm:$0xff]   ;;  %v341_v8 = vld [vmem:[%s467_s0 + $0x10] sm:$0xff]  }
   0xe   :  { %v340_v7 = vld [vmem:[%s467_s0 + $0x28] sm:$0xff]   ;;  %v342_v9 = vld [vmem:[%s467_s0 + $0x30] sm:$0xff]   ;;  %v343_v10 = vld [vmem:[%s467_s0 + $0x18] sm:$0xff]  }
   0xf   :  { %305 = vmatpush3.bf16.msra.mxu0 %v336_v5  ;;  %329 = vmatpush3.bf16.msra.mxu1 %v336_v5  ;;  %v344_v11 = vld [vmem:[%s467_s0 + $0x38] sm:$0xff]   ;;  %v265_v12 = vld [vmem:[%s469_s2] ss:$0 sm:$0xff]  ;;  %s369_s0 = smov [#allocation2]  }
  0x10   :  { %s254_s2 = sshll.u32 %s369_s0, 4  ;;  %s255_s2 = int_to_ptr.vmem [resolvable:$true] %s254_s2 }
  0x11   :  { %s345_s10 = scalar_lea.vmem %s255_s2, 2048  ;;  %p350_p1 = scmp.lt.s32.totalorder %s255_s2, %s255_s2 }
  0x12   :  { %307 = vmatmul.mubr.msk.bf16.vlgmr.msra.gmra.mrb[0].mxu0 %vm111_vm0, %v339_v6  ;;  %315 = vmatmul.mubr.msk.bf16.vlgmr.msra.gmra.mrb[0].mxu1 %vm111_vm0, %v340_v7  ;;  %p346_p0 = scmp.ne.s32.totalorder %s255_s2, %s345_s10  ;;  %p351_p2 = scmp.lt.s32.totalorder %s345_s10, %s345_s10 }
  0x13   :  { %310 = vmatprep.mubr.msk.bf16.mxu0 %vm111_vm0, %v341_v8  ;;  %318 = vmatprep.mubr.msk.bf16.mxu1 %vm111_vm0, %v342_v9 }
  0x14   :  { %p352_p3 = por %p351_p2, %p350_p1 }
  0x16   :  { %p353_p4 = pnand %p352_p3, %p346_p0 }
  0x1a   :  { %311 = vmatmul.mubr.msk.bf16.gmra.mrb[4].mxu0 %vm111_vm0, %v343_v10  ;;  %319 = vmatmul.mubr.msk.bf16.gmra.mrb[4].mxu1 %vm111_vm0, %v344_v11 }
  0xe5   :  { %v308_v13 = vpop.f32.mrb[0].mxu0  ;;  %v316_v14 = vpop.f32.mrb[0].mxu1 }
  0xe6   :  { %v179_v15 = vadd.f32 %v308_v13, %v265_v12  ;;  %v211_v16 = vadd.f32 %v316_v14, %v265_v12  ;;  %v170_v17 = vpop.f32.mrb[1].mxu0  ;;  %v202_v18 = vpop.f32.mrb[1].mxu1 }
  0xe7   :  { %v171_v19 = vadd.f32 %v265_v12, %v170_v17  ;;  %v203_v20 = vadd.f32 %v265_v12, %v202_v18  ;;  %v309_v21 = vpop.f32.mrb[2].mxu0  ;;  %v317_v22 = vpop.f32.mrb[2].mxu1 }
  0xe8   :  { %235 = vst.msk [vmem:[#allocation2 + $0x10] sm:$0xff] %vm111_vm0, %v179_v15  ;;  %243 = vst.msk [vmem:[#allocation2 + $0x50] sm:$0xff] %vm111_vm0, %v211_v16  ;;  %v182_v23 = vadd.f32 %v309_v21, %v265_v12  ;;  %v214_v24 = vadd.f32 %v317_v22, %v265_v12  ;;  %v173_v25 = vpop.f32.mrb[3].mxu0  ;;  %v205_v26 = vpop.f32.mrb[3].mxu1 }
  0xe9   :  { %233 = vst.msk [vmem:[#allocation2] sm:$0xff] %vm111_vm0, %v171_v19  ;;  %241 = vst.msk [vmem:[#allocation2 + $0x40] sm:$0xff] %vm111_vm0, %v203_v20  ;;  %v174_v27 = vadd.f32 %v265_v12, %v173_v25  ;;  %v206_v28 = vadd.f32 %v265_v12, %v205_v26 }
  0xea   :  { %236 = vst.msk [vmem:[#allocation2 + $0x18] sm:$0xff] %vm111_vm0, %v182_v23  ;;  %244 = vst.msk [vmem:[#allocation2 + $0x58] sm:$0xff] %vm111_vm0, %v214_v24 }
  0xeb   :  { %234 = vst.msk [vmem:[#allocation2 + $0x8] sm:$0xff] %vm111_vm0, %v174_v27  ;;  %242 = vst.msk [vmem:[#allocation2 + $0x48] sm:$0xff] %vm111_vm0, %v206_v28 }
  0xed   :  { %v312_v29 = vpop.f32.mrb[4].mxu0  ;;  %v320_v30 = vpop.f32.mrb[4].mxu1 }
  0xee   :  { %v195_v31 = vadd.f32 %v312_v29, %v265_v12  ;;  %v227_v32 = vadd.f32 %v320_v30, %v265_v12  ;;  %v186_v33 = vpop.f32.mrb[5].mxu0  ;;  %v218_v34 = vpop.f32.mrb[5].mxu1 }
  0xef   :  { %v187_v35 = vadd.f32 %v265_v12, %v186_v33  ;;  %v219_v36 = vadd.f32 %v265_v12, %v218_v34  ;;  %v313_v37 = vpop.f32.mrb[6].mxu0  ;;  %v321_v38 = vpop.f32.mrb[6].mxu1 }
  0xf0   :  { %239 = vst.msk [vmem:[#allocation2 + $0x30] sm:$0xff] %vm111_vm0, %v195_v31  ;;  %247 = vst.msk [vmem:[#allocation2 + $0x70] sm:$0xff] %vm111_vm0, %v227_v32  ;;  %v198_v39 = vadd.f32 %v313_v37, %v265_v12  ;;  %v230_v40 = vadd.f32 %v321_v38, %v265_v12  ;;  %v189_v41 = vpop.f32.mrb[7].mxu0  ;;  %v221_v42 = vpop.f32.mrb[7].mxu1 }
  0xf1   :  { %237 = vst.msk [vmem:[#allocation2 + $0x20] sm:$0xff] %vm111_vm0, %v187_v35  ;;  %245 = vst.msk [vmem:[#allocation2 + $0x60] sm:$0xff] %vm111_vm0, %v219_v36  ;;  %v190_v43 = vadd.f32 %v265_v12, %v189_v41  ;;  %v222_v44 = vadd.f32 %v265_v12, %v221_v42 }
  0xf2   :  { %240 = vst.msk [vmem:[#allocation2 + $0x38] sm:$0xff] %vm111_vm0, %v198_v39  ;;  %248 = vst.msk [vmem:[#allocation2 + $0x78] sm:$0xff] %vm111_vm0, %v230_v40 }
  0xf3   :  { %238 = vst.msk [vmem:[#allocation2 + $0x28] sm:$0xff] %vm111_vm0, %v190_v43  ;;  %246 = vst.msk [vmem:[#allocation2 + $0x68] sm:$0xff] %vm111_vm0, %v222_v44 }
  0xf4   :  { %356 = shalt.err (!%p353_p4)
}
  0xf5   :  { %s357_s13 = scalar_lea.hbm %s470_s3, 2048 }
  0xf6   :  { %p358_p5 = scmp.ne.s32.totalorder %s470_s3, %s357_s13  ;;  %p361_p6 = scmp.lt.u32.totalorder %s357_s13, %s470_s3 }
  0xf8   :  { %p363_p7 = pnand %p361_p6, %p358_p5 }
  0xfa   :  { %366 = shalt.err (!%p363_p7)
}
  0xfb   :  { %s370_s18 = smov 128   ;;  %s371_s19 = smov 8  }
  0xfc   :  { %260 = dma.vmem_to_hbm [thread:$0]  %s255_s2, 2048, %s470_s3, [#allocation3], %s370_s18, %s370_s18, %s371_s19  }
  0xfd   :  { %367 = dma.done.wait [#allocation3], 2048  }
  0xfe   :  { %368 = vsyncadd [#allocation3], 4294965248 }
  0xff   :  { %264 = vsyncpa [#allocation3], 1 }

// kernel: attention_forward.4
= control target key start
LH: loop header
LB: loop body
LE: loop exit
PB: predicated region body
PF: predicated region fallthrough
CT: control target
= control target key end

     0   :  { %s1462_s12 = smov 0   ;;  %s1464_s13 = smov 0   ;;  %s1767_s0 = inlined_call_operand.vmem [shape: bf16[2,8,64,24], index: 0, kind: input, shape index: {}]   ;;  %s1768_s1 = inlined_call_operand.vmem [shape: bf16[2,8,64,24], index: 1, kind: input, shape index: {}]   ;;  %s1769_s2 = inlined_call_operand.vmem [shape: bf16[2,8,64,8], index: 2, kind: input, shape index: {}]   ;;  %s1770_s3 = inlined_call_operand.vmem [shape: bf16[2,8,64,8], index: 3, kind: output, shape index: {}]  }
   0x1   :  { %s1466_s14 = smov 0   ;;  %s1468_s15 = smov 0  }
   0x2   :  { %s1470_s16 = smov 0  }
   0x3 LB: > { %s35_s17 = sadd.s32 1, %s1429_s14  ;;  %s39_s18 = sadd.s32 1, %s1433_s15  ;;  %s1437_s16 = sphi %s1470_s16, %s13_s16   ;;  %s1433_s15 = sphi %s1468_s15, %s1774_s15   ;;  %s1429_s14 = sphi %s1466_s14, %s1773_s14   ;;  %s1425_s13 = sphi %s1464_s13, %s1772_s13   ;;  %s1421_s12 = sphi %s1462_s12, %s1771_s12  }
   0x4   : > { %p37_p0 = scmp.ge.s32.totalorder %s35_s17, 8  ;;  %p1191_p1 = scmp.ge.s32.totalorder %s1437_s16, 1 }
   0x5   : > { %p226_p2 = scmp.lt.s32.totalorder %s1437_s16, 17 }
   0x6   : > { %s1776_s17 = smov (%p37_p0, %s35_s17), 0  ;;  %s1778_s18 = smov (!%p37_p0, %s39_s18), %s1433_s15 }
   0x7   : > { %p227_p3 = pnand %p1191_p1, %p226_p2  ;;  %p41_p4 = scmp.ge.s32.totalorder %s1778_s18, 2 }
   0x8   : > { %p293_p5 = scmp.lt.s32.totalorder (!%p227_p3), %s1425_s13, 1  ;;  %p295_p6 = scmp.lt.s32.totalorder (!%p227_p3), %s1421_s12, 7  ;;  %vm443_vm0 = vcmask (!%p227_p3), 195584   ;;  %vm353_vm1 = vcmask (!%p227_p3), 7168   ;;  %v1439_v12 = vmov (!%p227_p3), -inf   ;;  %vm541_vm2 = vcmask (!%p227_p3), 523264  }
   0x9   : > { %s1780_s18 = smov (%p41_p4, %s1778_s18), 0  ;;  %230 = sbr.rel (%p227_p3) target bundleno = 876 (0x36c), region = 32 }
   0xa   : > { %356 = vst.msk [vmem:[#allocation2 + $0x10] sm:$0xff] (!%p227_p3), %vm353_vm1, %v1439_v12  ;;  %354 = vst.msk [vmem:[#allocation2] sm:$0xff] (!%p227_p3), %vm353_vm1, %v1439_v12  ;;  %v1440_v29 = vmov (!%p227_p3), 0   ;;  %v1441_v30 = vmov (!%p227_p3), 0.0   ;;  %vm370_vm3 = vcmask (!%p227_p3), 64512   ;;  %vm1012_vm4 = vcmask (!%p227_p3), 60416  }
   0xb   : > { %355 = vst.msk [vmem:[#allocation2 + $0x8] sm:$0xff] (!%p227_p3), %vm353_vm1, %v1439_v12  ;;  %357 = vst.msk [vmem:[#allocation2 + $0x18] sm:$0xff] (!%p227_p3), %vm353_vm1, %v1439_v12  ;;  %1337 = vset.pattern.permute.xlu0 (!%p227_p3), %v1440_v29  ;;  %1338 = vset.pattern.permute.xlu1 (!%p227_p3), %v1440_v29 }
   0xc   : > { %358 = vst.msk [vmem:[#allocation2 + $0x20] sm:$0xff] (!%p227_p3), %vm353_vm1, %v1439_v12  ;;  %359 = vst.msk [vmem:[#allocation2 + $0x28] sm:$0xff] (!%p227_p3), %vm353_vm1, %v1439_v12 }
   0xd   : > { %360 = vst.msk [vmem:[#allocation2 + $0x30] sm:$0xff] (!%p227_p3), %vm353_vm1, %v1439_v12  ;;  %361 = vst.msk [vmem:[#allocation2 + $0x38] sm:$0xff] (!%p227_p3), %vm353_vm1, %v1439_v12 }
   0xe   : > { %364 = vst.msk [vmem:[#allocation3 + $0x10] sm:$0xff] (!%p227_p3), %vm353_vm1, %v1441_v30  ;;  %362 = vst.msk [vmem:[#allocation3] sm:$0xff] (!%p227_p3), %vm353_vm1, %v1441_v30 }
   0xf   : > { %363 = vst.msk [vmem:[#allocation3 + $0x8] sm:$0xff] (!%p227_p3), %vm353_vm1, %v1441_v30  ;;  %365 = vst.msk [vmem:[#allocation3 + $0x18] sm:$0xff] (!%p227_p3), %vm353_vm1, %v1441_v30 }
  0x10   : > { %s1782_s13 = smov (!%p293_p5, %s1425_s13), 1  ;;  %s1784_s12 = smov (!%p295_p6, %s1421_s12), 7  ;;  %366 = vst.msk [vmem:[#allocation3 + $0x20] sm:$0xff] %vm353_vm1, %v1441_v30  ;;  %367 = vst.msk [vmem:[#allocation3 + $0x28] sm:$0xff] %vm353_vm1, %v1441_v30 }
  0x11   : > { %s1193_s19 = sshll.u32 %s1782_s13, 6  ;;  %s1192_s20 = sshll.u32 %s1784_s12, 3  ;;  %368 = vst.msk [vmem:[#allocation3 + $0x30] sm:$0xff] %vm353_vm1, %v1441_v30  ;;  %369 = vst.msk [vmem:[#allocation3 + $0x38] sm:$0xff] %vm353_vm1, %v1441_v30  ;;  %v1570_v31 = vld [vmem:[#allocation2 + $0x10] sm:$0xff]  ;;  %v1572_v32 = vld [vmem:[#allocation2] sm:$0xff] }
  0x12   : > { %s302_s21 = sadd.s32 %s1193_s19, %s1192_s20  ;;  %v1580_v37 = vld [vmem:[#allocation2 + $0x18] sm:$0xff]  ;;  %v1587_v39 = vld [vmem:[#allocation2 + $0x8] sm:$0xff]  ;;  %371 = vst.msk [vmem:[#allocation4] sm:$0xff] %vm370_vm3, %v1441_v30  ;;  %372 = vst.msk [vmem:[#allocation4 + $0x8] sm:$0xff] %vm370_vm3, %v1441_v30 }
  0x13   : > { %s1492_s22 = sshll.u32 %s302_s21, 2  ;;  %v1605_v46 = vld [vmem:[#allocation2 + $0x20] sm:$0xff]  ;;  %v1611_v49 = vld [vmem:[#allocation2 + $0x28] sm:$0xff]  ;;  %373 = vst.msk [vmem:[#allocation4 + $0x10] sm:$0xff] %vm370_vm3, %v1441_v30  ;;  %374 = vst.msk [vmem:[#allocation4 + $0x18] sm:$0xff] %vm370_vm3, %v1441_v30 }
  0x14   : > { %s318_s25 = scalar_lea.vmem %s1768_s1, %s1492_s22  ;;  %s304_s28 = scalar_lea.vmem %s1767_s0, %s1492_s22  ;;  %v1616_v51 = vld [vmem:[#allocation2 + $0x30] sm:$0xff]  ;;  %v1623_v53 = vld [vmem:[#allocation2 + $0x38] sm:$0xff]  ;;  %375 = vst.msk [vmem:[#allocation4 + $0x20] sm:$0xff] %vm370_vm3, %v1441_v30  ;;  %376 = vst.msk [vmem:[#allocation4 + $0x28] sm:$0xff] %vm370_vm3, %v1441_v30 }
  0x15   : > { %v1339_v0 = vld [vmem:[%s318_s25] sm:$0xff]   ;;  %v1340_v1 = vld [vmem:[%s318_s25 + $0x8] sm:$0xff]   ;;  %v1341_v5 = vld [vmem:[%s318_s25 + $0x10] sm:$0xff]   ;;  %s332_s4 = scalar_lea.vmem %s1769_s2, %s1492_s22  ;;  %377 = vst.msk [vmem:[#allocation4 + $0x30] sm:$0xff] %vm370_vm3, %v1441_v30  ;;  %s1734_s7 = scalar_lea.vmem %s1770_s3, %s1492_s22 }
  0x16   : > { %1290 = vmatprep.subr.msk.bf16.mxu0 %vm443_vm0, %v1339_v0  ;;  %v457_v2 = vsel %vm443_vm0, %v1339_v0, 0  ;;  %v1343_v3 = vld [vmem:[%s304_s28] sm:$0xff]   ;;  %v460_v4 = vsel %vm443_vm0, %v1340_v1, 0  ;;  %v463_v6 = vsel %vm443_vm0, %v1341_v5, 0  ;;  %v1342_v7 = vld [vmem:[%s318_s25 + $0x18] sm:$0xff]   ;;  %v1344_v9 = vld [vmem:[%s304_s28 + $0x8] sm:$0xff]  }
  0x17   : > { %1259 = vmatpush3.bf16.xpose.msra.mxu0 %v457_v2  ;;  %1266 = vmatprep.mubr.msk.bf16.mxu0 %vm443_vm0, %v1343_v3  ;;  %v466_v8 = vsel %vm443_vm0, %v1342_v7, 0  ;;  %v1345_v10 = vld [vmem:[%s304_s28 + $0x10] sm:$0xff]   ;;  %v1346_v11 = vld [vmem:[%s304_s28 + $0x18] sm:$0xff]   ;;  %v1347_v54 = vld [vmem:[%s332_s4] sm:$0xff]   ;;  %378 = vst.msk [vmem:[#allocation4 + $0x38] sm:$0xff] %vm370_vm3, %v1441_v30 }
  0x18   : > { %1291 = vmatprep.subr.msk.bf16.mxu0 %vm443_vm0, %v1340_v1  ;;  %1274 = vmatprep.subr.bf16.mxu1 %v1347_v54  ;;  %v1348_v61 = vld [vmem:[%s332_s4 + $0x8] sm:$0xff]   ;;  %v1349_v1 = vld [vmem:[%s332_s4 + $0x10] sm:$0xff]   ;;  %v1350_v2 = vld [vmem:[%s332_s4 + $0x18] sm:$0xff]  }
  0x19   : > { %1275 = vmatpush3.bf16.msra.mxu1 %v1347_v54 }
  0x1a   : > { %1276 = vmatprep.subr.bf16.mxu1 %v1348_v61 }
  0x1d   : > { %1277 = vmatpush3.bf16.msra.mxu1 %v1348_v61 }
  0x1e   : > { %1278 = vmatprep.subr.bf16.mxu1 %v1349_v1 }
  0x1f   : > { %1261 = vmatpush3.bf16.xpose.msra.mxu0 %v460_v4 }
  0x20   : > { %1292 = vmatprep.subr.msk.bf16.mxu0 %vm443_vm0, %v1341_v5 }
  0x21   : > { %1279 = vmatpush3.bf16.msra.mxu1 %v1349_v1 }
  0x22   : > { %1280 = vmatprep.subr.bf16.mxu1 %v1350_v2 }
  0x25   : > { %1281 = vmatpush3.bf16.msra.mxu1 %v1350_v2 }
  0x27   : > { %1263 = vmatpush3.bf16.xpose.msra.mxu0 %v463_v6 }
  0x28   : > { %1293 = vmatprep.subr.msk.bf16.mxu0 %vm443_vm0, %v1342_v7 }
  0x2f   : > { %1265 = vmatpush3.bf16.xpose.msra.mxu0 %v466_v8 }
  0x36   : > { %1267 = vmatmul.mubr.msk.bf16.vlgmr.msra.gmra.mrb[0].mxu0 %vm443_vm0, %v1344_v9 }
  0x37   : > { %1270 = vmatprep.mubr.msk.bf16.mxu0 %vm443_vm0, %v1345_v10 }
  0x3e   : > { %1271 = vmatmul.mubr.msk.bf16.gmra.mrb[4].mxu0 %vm443_vm0, %v1346_v11 }
 0x109   : > { %v1522_v13 = vpop.f32.mrb[0].mxu0 }
 0x10a   : > { %v1524_v14 = vpop.f32.mrb[1].mxu0  ;;  %v548_v15 = vsel %vm541_vm2, %v1522_v13, -inf }
 0x10b   : > { %549 = vmax.xlane.f32.xlu1 %v548_v15  ;;  %v1528_v16 = vpop.f32.mrb[2].mxu0  ;;  %v542_v17 = vsel %vm541_vm2, %v1524_v14, -inf }
 0x10c   : > { %543 = vmax.xlane.f32.xlu0 %v542_v17  ;;  %v1532_v18 = vpop.f32.mrb[3].mxu0  ;;  %v551_v19 = vsel %vm541_vm2, %v1528_v16, -inf }
 0x10d   : > { %v545_v20 = vsel %vm541_vm2, %v1532_v18, -inf }
 0x10f   : > { %552 = vmax.xlane.f32.xlu1 %v551_v19 }
 0x110   : > { %546 = vmax.xlane.f32.xlu0 %v545_v20 }
 0x111   : > { %v1538_v21 = vpop.f32.mrb[4].mxu0 }
 0x112   : > { %v1540_v22 = vpop.f32.mrb[5].mxu0  ;;  %v560_v27 = vsel %vm541_vm2, %v1538_v21, -inf }
 0x113   : > { %v1542_v23 = vpop.f32.mrb[6].mxu0  ;;  %v554_v24 = vsel %vm541_vm2, %v1540_v22, -inf }
 0x114   : > { %555 = vmax.xlane.f32.xlu0 %v554_v24  ;;  %v1546_v25 = vpop.f32.mrb[7].mxu0  ;;  %v563_v28 = vsel %vm541_vm2, %v1542_v23, -inf }
 0x115   : > { %v557_v26 = vsel %vm541_vm2, %v1546_v25, -inf }
 0x116   : > { %558 = vmax.xlane.f32.xlu1 %v557_v26 }
 0x118   : > { %561 = vmax.xlane.f32.xlu0 %v560_v27 }
 0x11a   : > { %564 = vmax.xlane.f32.xlu1 %v563_v28 }
 0x198   : > { %v550_v33 = vpop.xlane.xlu1 %549 }
 0x199   : > { %v1575_v34 = vmax.f32 %v1570_v31, %v550_v33  ;;  %v544_v35 = vpop.xlane.xlu0 %543 }
 0x19a   : > { %v1578_v36 = vmax.f32 %v1572_v32, %v544_v35 }
 0x19b   : > { %v576_v38 = vsub.f32 %v1570_v31, %v1575_v34  ;;  %899 = vst.msk [vmem:[#allocation2 + $0x10] sm:$0xff] %vm353_vm1, %v1575_v34  ;;  %610 = vperm.xlu1 %1338, %v1575_v34  }
 0x19c   : > { %v574_v40 = vsub.f32 %v1572_v32, %v1578_v36  ;;  %897 = vst.msk [vmem:[#allocation2] sm:$0xff] %vm353_vm1, %v1578_v36  ;;  %v553_v41 = vpop.xlane.xlu1 %552  ;;  %600 = vperm.xlu0 %1337, %v1578_v36  }
 0x19d   : > { %v1595_v42 = vmax.f32 %v1580_v37, %v553_v41  ;;  %v547_v43 = vpop.xlane.xlu0 %546 }
 0x19e   : > { %v1598_v44 = vmax.f32 %v1587_v39, %v547_v43 }
 0x19f   : > { %v577_v45 = vsub.f32 %v1580_v37, %v1595_v42  ;;  %900 = vst.msk [vmem:[#allocation2 + $0x18] sm:$0xff] %vm353_vm1, %v1595_v42  ;;  %615 = vperm.xlu1 %1338, %v1595_v42  }
 0x1a0   : > { %v575_v47 = vsub.f32 %v1587_v39, %v1598_v44  ;;  %898 = vst.msk [vmem:[#allocation2 + $0x8] sm:$0xff] %vm353_vm1, %v1598_v44 }
 0x1a1   : > { %v556_v48 = vpop.xlane.xlu0 %555 }
 0x1a2   : > { %v1614_v50 = vmax.f32 %v1605_v46, %v556_v48 }
 0x1a3   : > { %605 = vperm.xlu1 %1338, %v1598_v44   ;;  %v559_v52 = vpop.xlane.xlu1 %558 }
 0x1a4   : > { %v578_v55 = vsub.f32 %v1605_v46, %v1614_v50  ;;  %901 = vst.msk [vmem:[#allocation2 + $0x20] sm:$0xff] %vm353_vm1, %v1614_v50  ;;  %v1630_v56 = vmax.f32 %v1611_v49, %v559_v52  ;;  %v664_v46 = vld [vmem:[#allocation3 + $0x10] sm:$0xff] }
 0x1a5   : > { %v562_v57 = vpop.xlane.xlu0 %561 }
 0x1a6   : > { %v579_v58 = vsub.f32 %v1611_v49, %v1630_v56  ;;  %902 = vst.msk [vmem:[#allocation2 + $0x28] sm:$0xff] %vm353_vm1, %v1630_v56  ;;  %v1637_v59 = vmax.f32 %v1616_v51, %v562_v57  ;;  %v590_v39 = vmul.f32 1.442695, %v578_v55 }
 0x1a7   : > { %v565_v60 = vpop.xlane.xlu1 %564 }
 0x1a8   : > { %v580_v62 = vsub.f32 %v1616_v51, %v1637_v59  ;;  %903 = vst.msk [vmem:[#allocation2 + $0x30] sm:$0xff] %vm353_vm1, %v1637_v59  ;;  %v1644_v63 = vmax.f32 %v1623_v53, %v565_v60  ;;  %630 = vperm.xlu1 %1338, %v1637_v59   ;;  %v592_v31 = vmul.f32 1.442695, %v579_v58 }
 0x1aa   : > { %v581_v0 = vsub.f32 %v1623_v53, %v1644_v63  ;;  %904 = vst.msk [vmem:[#allocation2 + $0x38] sm:$0xff] %vm353_vm1, %v1644_v63  ;;  %v594_v32 = vmul.f32 1.442695, %v580_v62  ;;  %v663_v62 = vld [vmem:[#allocation3 + $0x8] sm:$0xff] }
 0x1ac   : > { %620 = vperm.xlu1 %1338, %v1614_v50   ;;  %v596_v34 = vmul.f32 1.442695, %v581_v0 }
 0x1b0   : > { %625 = vperm.xlu1 %1338, %v1630_v56   ;;  %v665_v56 = vld [vmem:[#allocation3 + $0x18] sm:$0xff] }
 0x1b4   : > { %635 = vperm.xlu1 %1338, %v1644_v63  }
 0x21a   : > { %v611_v3 = vpop.permute.xlu1 %610 }
 0x21b   : > { %v640_v4 = vsub.f32 %v1522_v13, %v611_v3  ;;  %v601_v5 = vpop.permute.xlu0 %600 }
 0x21c   : > { %v638_v6 = vsub.f32 %v1524_v14, %v601_v5 }
 0x21d   : > { %v650_v7 = vmul.f32 1.442695, %v640_v4 }
 0x21e   : > { %v646_v8 = vmul.f32 1.442695, %v638_v6  ;;  %v616_v9 = vpop.permute.xlu1 %615 }
 0x21f   : > { %1351 = vpow2.f32 %v650_v7  ;;  %v641_v10 = vsub.f32 %v1528_v16, %v616_v9  ;;  %v582_v9 = vmul.f32 1.442695, %v574_v40 }
 0x220   : > { %1353 = vpow2.f32 %v646_v8  ;;  %v584_v8 = vmul.f32 1.442695, %v575_v47  ;;  %v662_v47 = vld [vmem:[#allocation3] sm:$0xff] }
 0x221   : > { %v652_v11 = vmul.f32 1.442695, %v641_v10  ;;  %v586_v10 = vmul.f32 1.442695, %v576_v38 }
 0x222   : > { %v606_v12 = vpop.permute.xlu1 %605 }
 0x223   : > { %1355 = vpow2.f32 %v652_v11  ;;  %v639_v15 = vsub.f32 %v1532_v18, %v606_v12  ;;  %v588_v11 = vmul.f32 1.442695, %v577_v45 }
 0x225   : > { %v648_v17 = vmul.f32 1.442695, %v639_v15 }
 0x227   : > { %1357 = vpow2.f32 %v648_v17  ;;  %v631_v19 = vpop.permute.xlu1 %630 }
 0x228   : > { %v644_v24 = vsub.f32 %v1538_v21, %v631_v19 }
 0x229   : > { %v1352_v20 = vpop.eup %1351 }
 0x22a   : > { %v1354_v13 = vpop.eup %1353  ;;  %v684_v14 = vsel %vm541_vm2, %v1352_v20, 0.0  ;;  %v658_v29 = vmul.f32 1.442695, %v644_v24 }
 0x22b   : > { %685 = vadd.xlane.f32.xlu0 %v684_v14  ;;  %v621_v26 = vpop.permute.xlu1 %620  ;;  %v678_v27 = vsel %vm541_vm2, %v1354_v13, 0.0 }
 0x22c   : > { %v642_v16 = vsub.f32 %v1540_v22, %v621_v26  ;;  %679 = vadd.xlane.f32.xlu1 %v678_v27  ;;  %v668_v27 = vld [vmem:[#allocation3 + $0x30] sm:$0xff] }
 0x22d   : > { %v1356_v28 = vpop.eup %1355 }
 0x22e   : > { %v654_v33 = vmul.f32 1.442695, %v642_v16  ;;  %v687_v18 = vsel %vm541_vm2, %v1356_v28, 0.0  ;;  %v776_v35 = vpack.c.bf16 %v1356_v28, %v1352_v20  ;;  %v666_v20 = vld [vmem:[#allocation3 + $0x20] sm:$0xff]  ;;  %v667_v16 = vld [vmem:[#allocation3 + $0x28] sm:$0xff] }
 0x22f   : > { %v626_v41 = vpop.permute.xlu1 %625 }
 0x230   : > { %1359 = vpow2.f32 %v654_v33  ;;  %v643_v43 = vsub.f32 %v1546_v25, %v626_v41  ;;  %688 = vadd.xlane.f32.xlu1 %v687_v18 }
 0x231   : > { %v1358_v21 = vpop.eup %1357  ;;  %1361 = vpow2.f32 %v658_v29 }
 0x232   : > { %v656_v48 = vmul.f32 1.442695, %v643_v43  ;;  %v681_v52 = vsel %vm541_vm2, %v1358_v21, 0.0  ;;  %v775_v54 = vpack.c.bf16 %v1358_v21, %v1354_v13  ;;  %v669_v43 = vld [vmem:[#allocation3 + $0x38] sm:$0xff] }
 0x233   : > { %682 = vadd.xlane.f32.xlu0 %v681_v52  ;;  %v636_v22 = vpop.permute.xlu1 %635 }
 0x234   : > { %1363 = vpow2.f32 %v656_v48  ;;  %v645_v57 = vsub.f32 %v1542_v23, %v636_v22  ;;  %1282 = vmatprep.mubr.msk.bf16.mxu1 %vm541_vm2, %v775_v54 }
 0x235   : > { %1283 = vmatmul.mubr.msk.bf16.vlgmr.msra.gmra.mrb[0].mxu1 %vm541_vm2, %v776_v35 }
 0x236   : > { %v660_v60 = vmul.f32 1.442695, %v645_v57 }
 0x238   : > { %1365 = vpow2.f32 %v660_v60 }
 0x239   : > { %1367 = vpow2.f32 %v584_v8 }
 0x23a   : > { %v1360_v61 = vpop.eup %1359  ;;  %1369 = vpow2.f32 %v582_v9 }
 0x23b   : > { %v690_v25 = vsel %vm541_vm2, %v1360_v61, 0.0  ;;  %v1362_v1 = vpop.eup %1361  ;;  %1371 = vpow2.f32 %v586_v10 }
 0x23c   : > { %691 = vadd.xlane.f32.xlu0 %v690_v25  ;;  %v696_v3 = vsel %vm541_vm2, %v1362_v1, 0.0  ;;  %1373 = vpow2.f32 %v588_v11 }
 0x23d   : > { %1375 = vpow2.f32 %v590_v39 }
 0x23e   : > { %v1364_v2 = vpop.eup %1363  ;;  %1377 = vpow2.f32 %v592_v31 }
 0x23f   : > { %v693_v4 = vsel %vm541_vm2, %v1364_v2, 0.0  ;;  %v777_v5 = vpack.c.bf16 %v1364_v2, %v1360_v61  ;;  %1379 = vpow2.f32 %v594_v32 }
 0x240   : > { %697 = vadd.xlane.f32.xlu0 %v696_v3  ;;  %694 = vadd.xlane.f32.xlu1 %v693_v4  ;;  %1381 = vpow2.f32 %v596_v34  ;;  %v721_v3 = vld [vmem:[#allocation4 + $0x10] sm:$0xff] }
 0x241   : > { %1286 = vmatprep.mubr.msk.bf16.mxu1 %vm541_vm2, %v777_v5  ;;  %v719_v5 = vld [vmem:[#allocation4] sm:$0xff] }
 0x242   : > { %v1366_v23 = vpop.eup %1365 }
 0x243   : > { %v699_v6 = vsel %vm541_vm2, %v1366_v23, 0.0  ;;  %v778_v7 = vpack.c.bf16 %v1366_v23, %v1362_v1  ;;  %v1368_v36 = vpop.eup %1367  ;;  %v722_v23 = vld [vmem:[#allocation4 + $0x18] sm:$0xff] }
 0x244   : > { %700 = vadd.xlane.f32.xlu1 %v699_v6  ;;  %v1370_v37 = vpop.eup %1369  ;;  %v671_v12 = vmul.f32 %v1368_v36, %v663_v62 }
 0x245   : > { %1287 = vmatmul.mubr.msk.bf16.gmra.mrb[4].mxu1 %vm541_vm2, %v778_v7  ;;  %v1372_v30 = vpop.eup %1371  ;;  %v670_v51 = vmul.f32 %v1370_v37, %v662_v47  ;;  %v720_v7 = vld [vmem:[#allocation4 + $0x8] sm:$0xff]  ;;  %v726_v47 = vld [vmem:[#allocation4 + $0x38] sm:$0xff] }
 0x246   : > { %v1374_v38 = vpop.eup %1373  ;;  %v672_v49 = vmul.f32 %v1372_v30, %v664_v46  ;;  %v723_v46 = vld [vmem:[#allocation4 + $0x20] sm:$0xff] }
 0x247   : > { %v1376_v40 = vpop.eup %1375  ;;  %v673_v59 = vmul.f32 %v1374_v38, %v665_v56 }
 0x248   : > { %v1378_v42 = vpop.eup %1377  ;;  %v674_v14 = vmul.f32 %v1376_v40, %v666_v20 }
 0x249   : > { %v1380_v44 = vpop.eup %1379  ;;  %v675_v18 = vmul.f32 %v1378_v42, %v667_v16 }
 0x24a   : > { %v1382_v45 = vpop.eup %1381  ;;  %v676_v33 = vmul.f32 %v1380_v44, %v668_v27 }
 0x24b   : > { %v677_v52 = vmul.f32 %v1382_v45, %v669_v43 }
 0x255   : > { %734 = vperm.xlu1 %1338, %v1368_v36  }
 0x256   : > { %729 = vperm.xlu0 %1337, %v1370_v37  }
 0x259   : > { %739 = vperm.xlu1 %1338, %v1372_v30  }
 0x25a   : > { %744 = vperm.xlu0 %1337, %v1374_v38  }
 0x25d   : > { %749 = vperm.xlu1 %1338, %v1376_v40  }
 0x25e   : > { %754 = vperm.xlu0 %1337, %v1378_v42  }
 0x261   : > { %759 = vperm.xlu1 %1338, %v1380_v44   ;;  %v725_v44 = vld [vmem:[#allocation4 + $0x30] sm:$0xff] }
 0x262   : > { %764 = vperm.xlu0 %1337, %v1382_v45  }
 0x2b8   : > { %v686_v50 = vpop.xlane.xlu0 %685 }
 0x2b9   : > { %v704_v53 = vadd.f32 %v686_v50, %v672_v49  ;;  %v680_v55 = vpop.xlane.xlu1 %679  ;;  %v724_v50 = vld [vmem:[#allocation4 + $0x28] sm:$0xff] }
 0x2ba   : > { %v702_v58 = vadd.f32 %v680_v55, %v670_v51 }
 0x2bb   : > { %713 = vst.msk [vmem:[#allocation3 + $0x10] sm:$0xff] %vm353_vm1, %v704_v53 }
 0x2bc   : > { %711 = vst.msk [vmem:[#allocation3] sm:$0xff] %vm353_vm1, %v702_v58 }
 0x2bd   : > { %v689_v63 = vpop.xlane.xlu1 %688 }
 0x2be   : > { %v705_v0 = vadd.f32 %v689_v63, %v673_v59 }
 0x2c0   : > { %714 = vst.msk [vmem:[#allocation3 + $0x18] sm:$0xff] %vm353_vm1, %v705_v0  ;;  %v683_v15 = vpop.xlane.xlu0 %682 }
 0x2c1   : > { %v703_v17 = vadd.f32 %v683_v15, %v671_v12 }
 0x2c2   : > { %v918_v19 = vld [vmem:[#allocation3 + $0x10] sm:$0xff] }
 0x2c3   : > { %712 = vst.msk [vmem:[#allocation3 + $0x8] sm:$0xff] %vm353_vm1, %v703_v17  ;;  %936 = vperm.xlu1 %1338, %v918_v19   ;;  %v916_v13 = vld [vmem:[#allocation3] sm:$0xff] }
 0x2c7   : > { %926 = vperm.xlu1 %1338, %v916_v13   ;;  %v919_v24 = vld [vmem:[#allocation3 + $0x18] sm:$0xff] }
 0x2c8   : > { %941 = vperm.xlu0 %1337, %v919_v24  }
 0x2c9   : > { %v692_v26 = vpop.xlane.xlu0 %691 }
 0x2ca   : > { %v706_v28 = vadd.f32 %v692_v26, %v674_v14  ;;  %v917_v29 = vld [vmem:[#allocation3 + $0x8] sm:$0xff] }
 0x2cc   : > { %715 = vst.msk [vmem:[#allocation3 + $0x20] sm:$0xff] %vm353_vm1, %v706_v28  ;;  %931 = vperm.xlu0 %1337, %v917_v29  }
 0x2cd   : > { %v698_v35 = vpop.xlane.xlu0 %697  ;;  %v695_v41 = vpop.xlane.xlu1 %694 }
 0x2ce   : > { %v708_v21 = vadd.f32 %v698_v35, %v676_v33  ;;  %v707_v48 = vadd.f32 %v695_v41, %v675_v18 }
 0x2d0   : > { %717 = vst.msk [vmem:[#allocation3 + $0x30] sm:$0xff] %vm353_vm1, %v708_v21  ;;  %716 = vst.msk [vmem:[#allocation3 + $0x28] sm:$0xff] %vm353_vm1, %v707_v48 }
 0x2d1   : > { %v701_v54 = vpop.xlane.xlu1 %700 }
 0x2d2   : > { %v709_v22 = vadd.f32 %v701_v54, %v677_v52 }
 0x2d3   : > { %v920_v57 = vld [vmem:[#allocation3 + $0x20] sm:$0xff] }
 0x2d4   : > { %718 = vst.msk [vmem:[#allocation3 + $0x38] sm:$0xff] %vm353_vm1, %v709_v22  ;;  %946 = vperm.xlu1 %1338, %v920_v57  }
 0x2d5   : > { %v735_v1 = vpop.permute.xlu1 %734  ;;  %v730_v2 = vpop.permute.xlu0 %729 }
 0x2d6   : > { %v767_v9 = vmul.f32 %v730_v2, %v719_v5  ;;  %v768_v32 = vmul.f32 %v735_v1, %v720_v7 }
 0x2d7   : > { %v922_v60 = vld [vmem:[#allocation3 + $0x30] sm:$0xff]  ;;  %v921_v61 = vld [vmem:[#allocation3 + $0x28] sm:$0xff] }
 0x2d8   : > { %956 = vperm.xlu1 %1338, %v922_v60   ;;  %951 = vperm.xlu0 %1337, %v921_v61  }
 0x2d9   : > { %v740_v4 = vpop.permute.xlu1 %739  ;;  %v745_v6 = vpop.permute.xlu0 %744 }
 0x2da   : > { %v769_v8 = vmul.f32 %v740_v4, %v721_v3  ;;  %v770_v11 = vmul.f32 %v745_v6, %v722_v23 }
 0x2db   : > { %v923_v25 = vld [vmem:[#allocation3 + $0x38] sm:$0xff] }
 0x2dc   : > { %961 = vperm.xlu0 %1337, %v923_v25  }
 0x2dd   : > { %v750_v40 = vpop.permute.xlu1 %749  ;;  %v755_v42 = vpop.permute.xlu0 %754 }
 0x2de   : > { %v771_v53 = vmul.f32 %v750_v40, %v723_v46  ;;  %v772_v62 = vmul.f32 %v755_v42, %v724_v50 }
 0x2e1   : > { %v760_v45 = vpop.permute.xlu1 %759  ;;  %v765_v49 = vpop.permute.xlu0 %764 }
 0x2e2   : > { %v773_v51 = vmul.f32 %v760_v45, %v725_v44  ;;  %v774_v56 = vmul.f32 %v765_v49, %v726_v47 }
 0x308   : > { %v1284_v10 = vpop.f32.mrb[0].mxu1 }
 0x309   : > { %v882_v39 = vadd.f32 %v1284_v10, %v769_v8  ;;  %v849_v31 = vpop.f32.mrb[1].mxu1 }
 0x30a   : > { %v880_v34 = vadd.f32 %v849_v31, %v767_v9  ;;  %v1285_v36 = vpop.f32.mrb[2].mxu1 }
 0x30b   : > { %891 = vst.msk [vmem:[#allocation4 + $0x10] sm:$0xff] %vm370_vm3, %v882_v39  ;;  %v883_v37 = vadd.f32 %v1285_v36, %v770_v11  ;;  %v852_v30 = vpop.f32.mrb[3].mxu1 }
 0x30c   : > { %889 = vst.msk [vmem:[#allocation4] sm:$0xff] %vm370_vm3, %v880_v34  ;;  %v881_v38 = vadd.f32 %v852_v30, %v768_v32 }
 0x30d   : > { %892 = vst.msk [vmem:[#allocation4 + $0x18] sm:$0xff] %vm370_vm3, %v883_v37 }
 0x30e   : > { %890 = vst.msk [vmem:[#allocation4 + $0x8] sm:$0xff] %vm370_vm3, %v881_v38 }
 0x312   : > { %v910_v26 = vld [vmem:[#allocation4 + $0x10] sm:$0xff] }
 0x313   : > { %v908_v29 = vld [vmem:[#allocation4] sm:$0xff] }
 0x314   : > { %v911_v35 = vld [vmem:[#allocation4 + $0x18] sm:$0xff] }
 0x315   : > { %v909_v54 = vld [vmem:[#allocation4 + $0x8] sm:$0xff] }
 0x318   : > { %v1288_v55 = vpop.f32.mrb[4].mxu1 }
 0x319   : > { %v886_v58 = vadd.f32 %v1288_v55, %v773_v51  ;;  %v865_v59 = vpop.f32.mrb[5].mxu1 }
 0x31a   : > { %v884_v63 = vadd.f32 %v865_v59, %v771_v53  ;;  %v1289_v0 = vpop.f32.mrb[6].mxu1 }
 0x31b   : > { %895 = vst.msk [vmem:[#allocation4 + $0x30] sm:$0xff] %vm370_vm3, %v886_v58  ;;  %v887_v12 = vadd.f32 %v1289_v0, %v774_v56  ;;  %v868_v15 = vpop.f32.mrb[7].mxu1 }
 0x31c   : > { %893 = vst.msk [vmem:[#allocation4 + $0x20] sm:$0xff] %vm370_vm3, %v884_v63  ;;  %v885_v17 = vadd.f32 %v868_v15, %v772_v62 }
 0x31d   : > { %896 = vst.msk [vmem:[#allocation4 + $0x38] sm:$0xff] %vm370_vm3, %v887_v12 }
 0x31e   : > { %894 = vst.msk [vmem:[#allocation4 + $0x28] sm:$0xff] %vm370_vm3, %v885_v17 }
 0x322   : > { %v914_v8 = vld [vmem:[#allocation4 + $0x30] sm:$0xff] }
 0x323   : > { %v912_v2 = vld [vmem:[#allocation4 + $0x20] sm:$0xff] }
 0x324   : > { %v915_v31 = vld [vmem:[#allocation4 + $0x38] sm:$0xff] }
 0x325   : > { %v913_v23 = vld [vmem:[#allocation4 + $0x28] sm:$0xff] }
 0x342   : > { %v937_v19 = vpop.permute.xlu1 %936 }
 0x343   : > { %1383 = vrcp.f32 %v937_v19 }
 0x346   : > { %v927_v20 = vpop.permute.xlu1 %926 }
 0x347   : > { %1385 = vrcp.f32 %v927_v20  ;;  %v942_v13 = vpop.permute.xlu0 %941 }
 0x348   : > { %1387 = vrcp.f32 %v942_v13 }
 0x34b   : > { %v932_v24 = vpop.permute.xlu0 %931 }
 0x34c   : > { %1389 = vrcp.f32 %v932_v24 }
 0x34d   : > { %v1384_v14 = vpop.eup %1383 }
 0x34e   : > { %v969_v27 = vmul.f32 %v1384_v14, %v910_v26 }
 0x350   : > { %v1236_v16 = vpack.c.bf16 %v969_v27, %v969_v27 }
 0x351   : > { %v1386_v28 = vpop.eup %1385 }
 0x352   : > { %v1388_v33 = vpop.eup %1387  ;;  %1015 = vst.msk [vmem:[%s1734_s7 + $0x8] sm:$0xf] %vm1012_vm4, %v1236_v16  ;;  %v965_v18 = vmul.f32 %v1386_v28, %v908_v29 }
 0x353   : > { %v971_v41 = vmul.f32 %v1388_v33, %v911_v35  ;;  %v947_v43 = vpop.permute.xlu1 %946 }
 0x354   : > { %v1234_v21 = vpack.c.bf16 %v965_v18, %v965_v18  ;;  %1391 = vrcp.f32 %v947_v43 }
 0x355   : > { %v1237_v48 = vpack.c.bf16 %v971_v41, %v971_v41 }
 0x356   : > { %v1390_v52 = vpop.eup %1389  ;;  %1013 = vst.msk [vmem:[%s1734_s7] sm:$0xf] %vm1012_vm4, %v1234_v21 }
 0x357   : > { %1016 = vst.msk [vmem:[%s1734_s7 + $0xc] sm:$0xf] %vm1012_vm4, %v1237_v48  ;;  %v967_v22 = vmul.f32 %v1390_v52, %v909_v54  ;;  %v952_v57 = vpop.permute.xlu0 %951  ;;  %v957_v60 = vpop.permute.xlu1 %956 }
 0x358   : > { %1393 = vrcp.f32 %v952_v57 }
 0x359   : > { %v1235_v61 = vpack.c.bf16 %v967_v22, %v967_v22  ;;  %1395 = vrcp.f32 %v957_v60 }
 0x35b   : > { %1014 = vst.msk [vmem:[%s1734_s7 + $0x4] sm:$0xf] %vm1012_vm4, %v1235_v61  ;;  %v962_v25 = vpop.permute.xlu0 %961 }
 0x35c   : > { %1397 = vrcp.f32 %v962_v25 }
 0x35e   : > { %v1392_v1 = vpop.eup %1391 }
 0x35f   : > { %v973_v3 = vmul.f32 %v1392_v1, %v912_v2 }
 0x361   : > { %v1238_v4 = vpack.c.bf16 %v973_v3, %v973_v3 }
 0x362   : > { %v1394_v5 = vpop.eup %1393 }
 0x363   : > { %v1396_v6 = vpop.eup %1395  ;;  %1017 = vst.msk [vmem:[%s1734_s7 + $0x10] sm:$0xf] %vm1012_vm4, %v1238_v4  ;;  %v975_v7 = vmul.f32 %v1394_v5, %v913_v23 }
 0x364   : > { %v977_v9 = vmul.f32 %v1396_v6, %v914_v8 }
 0x365   : > { %v1239_v10 = vpack.c.bf16 %v975_v7, %v975_v7 }
 0x366   : > { %v1398_v11 = vpop.eup %1397  ;;  %v1240_v39 = vpack.c.bf16 %v977_v9, %v977_v9 }
 0x367   : > { %1018 = vst.msk [vmem:[%s1734_s7 + $0x14] sm:$0xf] %vm1012_vm4, %v1239_v10  ;;  %v979_v32 = vmul.f32 %v1398_v11, %v915_v31 }
 0x368   : > { %1019 = vst.msk [vmem:[%s1734_s7 + $0x18] sm:$0xf] %vm1012_vm4, %v1240_v39 }
 0x369   : > { %v1241_v34 = vpack.c.bf16 %v979_v32, %v979_v32 }
 0x36b   : > { %1020 = vst.msk [vmem:[%s1734_s7 + $0x1c] sm:$0xf] %vm1012_vm4, %v1241_v34 }
 0x36c PF: > { %s13_s16 = sadd.s32 1, %s1437_s16   ;;  %s1771_s12 = smov %s1429_s14 }
 0x36d   : > { %p10_p7 = scmp.ge.s32.totalorder %s13_s16, 18   ;;  %s1772_s13 = smov %s1433_s15 }
 0x36e   : > { %s1773_s14 = smov %s1776_s17  ;;  %s1774_s15 = smov %s1780_s18 }
 0x36f   :  { %12 = sbr.rel (!%p10_p7) target bundleno = 3 (0x3), region = 76 }

</bundles_post_ra>
